<compile_context>
chip_gen: v6e
topology: v6e:2x2x1
jax: 0.10.0
libtpu: 0.0.40
codegen_flags: <defaults>
</compile_context>

<pallas_src>
import functools
import math

import jax
import jax.numpy as jnp
from jax.experimental import pallas as pl
from jax.experimental.pallas import tpu as pltpu


def _matmul_nt(a, b):
    # a @ b.T without materializing a transpose (contract the last dims).
    return jax.lax.dot_general(
        a, b, (((1,), (1,)), ((), ())), preferred_element_type=jnp.float32
    )


def _padded_block_bytes(shape, dtype):
    """VMEM footprint of one block, last two dims padded to the (8, 128) tile."""
    dims = list(shape) if len(shape) >= 2 else [1] + list(shape)
    dims[-1] = -(-dims[-1] // 128) * 128
    dims[-2] = -(-dims[-2] // 8) * 8
    return math.prod(dims) * jnp.dtype(dtype).itemsize


def _vmem_limit_bytes(blocks):
    """Explicit scoped-VMEM budget: 2x (double buffering) + headroom, floored at
    32 MiB so we never set it below the default."""
    total = sum(_padded_block_bytes(s, d) for s, d in blocks)
    return int(min(100 << 20, max(32 << 20, 2 * total + (4 << 20))))


def _pick_batch_block(batch, per_batch_bytes, budget=8 << 20):
    """Largest Bt dividing B such that (a) >=2 grid steps remain when B >= 2
    (lets dimension_semantics=("parallel",) split across v7x's two TensorCores)
    and (b) the per-step streamed blocks stay within `budget` bytes."""
    best = 1
    for bt in range(1, batch + 1):
        if batch % bt:
            continue
        if batch >= 2 and batch // bt < 2:
            continue
        if bt * per_batch_bytes > budget:
            continue
        best = bt
    return best


# ----------------------------------------------------------------------------
# Kernel 1: TopK_with_h scoring (batch-blocked)
# ----------------------------------------------------------------------------
def _score_kernel(ht_ref, wmap_ref, bmap_ref, ne_ref, mask_ref,
                  scores_ref, scorer_ref):
    bt = ht_ref.shape[0]
    wmap = wmap_ref[...]                                    # (D, R) f32, loaded once
    bmap = bmap_ref[...]                                    # (1, D) f32
    for b in range(bt):                                     # static unroll over the block
        ht = ht_ref[b]                                      # (1, R) f32
        scorer = jnp.tanh(_matmul_nt(ht, wmap) + bmap)      # (1, D) f32
        # node_embs . scorer — hand the MXU matching storage-dtype operands, f32 acc.
        s = _matmul_nt(scorer.astype(ne_ref.dtype), ne_ref[b])        # (1, N) f32
        # divide by ||scorer|| via EUP rsqrt (eps guards an all-zero scorer;
        # not bit-identical to torch's exact divide).
        s = s * jax.lax.rsqrt(jnp.sum(scorer * scorer) + 1e-12)
        s = jnp.where(mask_ref[b] > 0.5, jnp.float32(1e-9), s)        # masked_fill_
        scores_ref[b] = s
        scorer_ref[b] = scorer


def topk_scores(ht, Wmap, bmap, node_embs, mask, batch_block):
    B, N, D = node_embs.shape
    R = ht.shape[-1]
    Bt = batch_block
    assert B % Bt == 0, "batch block must divide the batch size"

    blocks = [((Bt, 1, R), jnp.float32), ((D, R), Wmap.dtype), ((1, D), bmap.dtype),
              ((Bt, N, D), node_embs.dtype), ((Bt, 1, N), jnp.float32),
              ((Bt, 1, N), jnp.float32), ((Bt, 1, D), jnp.float32)]

    scores, scorer = pl.pallas_call(
        _score_kernel,
        grid=(B // Bt,),
        in_specs=[
            pl.BlockSpec((Bt, 1, R), lambda i: (i, 0, 0)),   # ht
            pl.BlockSpec((D, R), lambda i: (0, 0)),          # Wmap (broadcast)
            pl.BlockSpec((1, D), lambda i: (0, 0)),          # bmap (broadcast)
            pl.BlockSpec((Bt, N, D), lambda i: (i, 0, 0)),   # node_embs
            pl.BlockSpec((Bt, 1, N), lambda i: (i, 0, 0)),   # mask
        ],
        out_specs=[
            pl.BlockSpec((Bt, 1, N), lambda i: (i, 0, 0)),
            pl.BlockSpec((Bt, 1, D), lambda i: (i, 0, 0)),
        ],
        out_shape=[
            jax.ShapeDtypeStruct((B, 1, N), jnp.float32),
            jax.ShapeDtypeStruct((B, 1, D), jnp.float32),
        ],
        compiler_params=pltpu.CompilerParams(
            dimension_semantics=("parallel",),
            vmem_limit_bytes=_vmem_limit_bytes(blocks)),
    )(ht.astype(jnp.float32).reshape(B, 1, R), Wmap, bmap.reshape(1, D),
      node_embs, mask.astype(jnp.float32).reshape(B, 1, N))
    return scores.reshape(B, N), scorer.reshape(B, D)


# ----------------------------------------------------------------------------
# Kernel 2: fused top-k gather + mat-GRU cell + attention + norm + double GCN
#           (batch-blocked; top-k indices via SMEM scalar prefetch)
# ----------------------------------------------------------------------------
def _fused_kernel(idx_ref,                                  # SMEM (B*K,) int32 (prefetch)
                  tkv_ref, ne_ref, adj_ref, wlf_ref, ht_ref, h_ref,
                  wcat_ref, ucat_ref, uhh_ref, bcat_ref,
                  wm_ref, bm_ref, wi_ref, bi_ref, g_ref, astat_ref,
                  out_ref, afinal_ref):
    bt, N, D = ne_ref.shape
    K = h_ref.shape[1]

    # Loop-invariant loads / iotas hoisted (JAX does not CSE broadcasts).
    wcat = wcat_ref[...]; ucat = ucat_ref[...]; uhh = uhh_ref[...]
    bcat = bcat_ref[...]
    wm = wm_ref[...]; bm = bm_ref[...]
    wi = wi_ref[...]; bi = bi_ref[...]
    g = g_ref[...]; astat = astat_ref[...]
    lane = jax.lax.broadcasted_iota(jnp.int32, (K, N), 1)
    row = jax.lax.broadcasted_iota(jnp.int32, (K, N), 0)

    step = pl.program_id(0)

    for b in range(bt):                                     # static unroll over the block
        bflat = (step * bt + b) * K                         # offset into flat SMEM indices

        # ---- one-hot selection matrix from SMEM scalar indices ----
        onehot = jnp.zeros((K, N), jnp.float32)
        for k in range(K):
            hit = jnp.logical_and(row == k, lane == idx_ref[bflat + k])
            onehot = jnp.where(hit, jnp.float32(1.0), onehot)
        oh_ne = onehot.astype(ne_ref.dtype)
        oh_adj = onehot.astype(adj_ref.dtype)

        # ---- top-k gather via selection matmuls (MXU; exact for bf16 inputs) ----
        sel = jnp.dot(oh_ne, ne_ref[b], preferred_element_type=jnp.float32)        # (K, D)
        adj_rows = jnp.dot(oh_adj, adj_ref[b], preferred_element_type=jnp.float32)  # (K, N)
        adj_g = _matmul_nt(adj_rows.astype(adj_ref.dtype), oh_adj)                  # (K, K)

        # topK_node_embs * tanh(topk scores) — scores arrive pre-gathered (lax.top_k vals)
        sel_scaled = sel * jnp.tanh(tkv_ref[b])                                     # (K, D)

        # ---- fused mat_GRU_cell with stacked gate matmuls (all f32) ----
        h = h_ref[b]                                                                # (K, K)
        wx = _matmul_nt(wcat, sel_scaled)                   # (3K, K) = [Wu;Wr;Wh] @ sel^T
        u_ur = jnp.dot(ucat, h, preferred_element_type=jnp.float32)  # (2K, K) = [Uu;Ur] @ H
        upd = jax.nn.sigmoid(wx[0:K] + u_ur[0:K] + bcat[0:K])
        rst = jax.nn.sigmoid(wx[K:2 * K] + u_ur[K:2 * K] + bcat[K:2 * K])
        htil = jnp.tanh(wx[2 * K:3 * K]
                        + jnp.dot(uhh, rst * h, preferred_element_type=jnp.float32)
                        + bcat[2 * K:3 * K])
        A_gru = (1.0 - upd) * h + upd * htil                # updated evolve_A (GRU part)

        # ---- word mapping + attention (uses the *unscaled* gathered embeddings) ----
        wlf_m = _matmul_nt(wlf_ref[b].astype(jnp.float32), wm) + bm                 # (L, D)
        attn = _matmul_nt(sel, wlf_m)                                               # (K, L)
        attn_A = _matmul_nt(attn, attn)                                             # (K, K)

        # ---- D^-1/2 A D^-1/2 normalization (torch: di = Adj.sum(dim=1)) ----
        colsum = jnp.sum(adj_g, axis=0, keepdims=True)                              # (1, K)
        # torch pow(-1/2) gives inf for isolated nodes; we guard to 0 instead.
        di = jnp.where(colsum > 0.0, jax.lax.rsqrt(colsum), jnp.float32(0.0))
        adj_n = di * adj_g * di.T                           # adj[i,j] * di[i] * di[j]

        A = A_gru + adj_n + attn_A                          # new evolve_A state

        # ---- rank-1 GCN weights: GCN_w = outer(tanh(init_mapping(ht)), g) ----
        hm = jnp.tanh(_matmul_nt(ht_ref[b], wi) + bi)                               # (1, D)
        v = _matmul_nt(sel, hm)                                                     # (K, 1)
        dyn = jnp.maximum(jnp.dot(A, v, preferred_element_type=jnp.float32) * g, 0.0)
        stat = jnp.maximum(jnp.dot(astat, v, preferred_element_type=jnp.float32) * g, 0.0)

        out_ref[b] = ((dyn + stat) * 0.5).astype(out_ref.dtype)
        afinal_ref[b] = A.astype(afinal_ref.dtype)


def sem_fused(topk_idx, topk_vals, node_embs, Adj, word_feats, ht, prev_H,
              Wcat, Ucat, Uh, bcat, Wm, bm, Wi, bi, g, A_static, batch_block):
    B, N, D = node_embs.shape
    K = topk_vals.shape[1]
    L, R = word_feats.shape[1], word_feats.shape[2]
    Bt = batch_block
    assert B % Bt == 0, "batch block must divide the batch size"

    idx_flat = topk_idx.astype(jnp.int32).reshape(B * K)    # SMEM scalar-prefetch vector
    tkv = topk_vals.astype(jnp.float32).reshape(B, K, 1)
    ht3 = ht.astype(jnp.float32).reshape(B, 1, R)

    def batched(shape):
        zeros = (0,) * (len(shape) - 1)
        return pl.BlockSpec(shape, lambda i, idx: (i,) + zeros)

    def shared(shape):
        zeros = (0,) * len(shape)
        return pl.BlockSpec(shape, lambda i, idx: zeros)

    blocks = [
        ((Bt, K, 1), jnp.float32), ((Bt, N, D), node_embs.dtype),
        ((Bt, N, N), Adj.dtype), ((Bt, L, R), word_feats.dtype),
        ((Bt, 1, R), jnp.float32), ((Bt, K, K), prev_H.dtype),
        ((3 * K, D), Wcat.dtype), ((2 * K, K), Ucat.dtype), ((K, K), Uh.dtype),
        ((3 * K, K), bcat.dtype), ((D, R), Wm.dtype), ((1, D), bm.dtype),
        ((D, R), Wi.dtype), ((1, D), bi.dtype), ((1, D), g.dtype),
        ((K, K), A_static.dtype),
        ((Bt, K, D), jnp.float32), ((Bt, K, K), jnp.float32),
    ]

    grid_spec = pltpu.PrefetchScalarGridSpec(
        num_scalar_prefetch=1,
        grid=(B // Bt,),
        in_specs=[
            batched((Bt, K, 1)),      # top-k score values (pre-gathered by lax.top_k)
            batched((Bt, N, D)),      # node_embs (full, gathered in-kernel)
            batched((Bt, N, N)),      # Adj (full, gathered in-kernel)
            batched((Bt, L, R)),      # word-level features
            batched((Bt, 1, R)),      # ht
            batched((Bt, K, K)),      # prev_H (evolve_A)
            shared((3 * K, D)),       # [Wu;Wr;Wh]
            shared((2 * K, K)),       # [Uu;Ur]
            shared((K, K)),           # Uh
            shared((3 * K, K)),       # [bu;br;bh]
            shared((D, R)),           # SEM.mapper W
            shared((1, D)),           # SEM.mapper b
            shared((D, R)),           # init_mapping W
            shared((1, D)),           # init_mapping b
            shared((1, D)),           # GCN_init_mapping
            shared((K, K)),           # evolve_A_static
        ],
        out_specs=[
            batched((Bt, K, D)),
            batched((Bt, K, K)),
        ],
    )

    out, A_final = pl.pallas_call(
        _fused_kernel,
        grid_spec=grid_spec,
        out_shape=(jax.ShapeDtypeStruct((B, K, D), jnp.float32),
                   jax.ShapeDtypeStruct((B, K, K), jnp.float32)),
        # batch axis parallel: megacore split on v7x; near-free serial loop on v5e/v6e.
        compiler_params=pltpu.CompilerParams(
            dimension_semantics=("parallel",),
            vmem_limit_bytes=_vmem_limit_bytes(blocks)),
    )(idx_flat, tkv, node_embs, Adj, word_feats, ht3, prev_H,
      Wcat, Ucat, Uh, bcat, Wm, bm.reshape(1, D), Wi, bi.reshape(1, D),
      g, A_static)
    return out, A_final


# ----------------------------------------------------------------------------
# Full SEM forward
# ----------------------------------------------------------------------------
def sem_forward(p, Adj, node_embs, word_feats, mask, ht, gcn_topk,
                batch_block=None):
    B, N, D = node_embs.shape
    K = gcn_topk
    L, R = word_feats.shape[1], word_feats.shape[2]

    if batch_block is None:
        per_batch = ((N * N) * Adj.dtype.itemsize
                     + (N * D) * node_embs.dtype.itemsize
                     + (L * R) * word_feats.dtype.itemsize
                     + (2 * K * K + K * D) * 4)
        batch_block = _pick_batch_block(B, per_batch)

    # ---- TopK_with_h scoring (Pallas, batch-blocked) ----
    scores, scorer = topk_scores(ht, p["Wmap_topk"], p["bmap_topk"],
                                 node_embs, mask, batch_block)

    # ---- data-dependent selection + distribution stats (plain JAX, tiny) ----
    topk_vals, topk_idx = jax.lax.top_k(scores, K)                # (B, K) each
    lp = jax.nn.log_softmax(scores, axis=1)                       # stable log(probs)
    probs = jnp.exp(lp)
    entropy = -jnp.sum(probs * lp, axis=1)                        # Categorical entropy
    policy_score = jnp.mean(jnp.take_along_axis(lp, topk_idx, axis=1), axis=1)

    # ---- fused gather + GRU + attention + norm + double GCN (Pallas) ----
    node_out, A_final = sem_fused(
        topk_idx, topk_vals, node_embs, Adj, word_feats, ht,
        p["evolve_A"], p["Wcat"], p["Ucat"], p["Uh"], p["bcat"],
        p["Wm"], p["bm"], p["Wi"], p["bi"],
        p["GCN_init_mapping"], p["A_static"], batch_block)

    # A_final is the updated self.evolve_A.data state (not part of the torch
    # return tuple; returned so the state update is observable).
    return node_out, policy_score, scorer, entropy, A_final


# ----------------------------------------------------------------------------
# Deterministic parameter init (mirrors module __init__ shapes);
# GRU gate weights are pre-stacked here, not per-call inside jit.
# ----------------------------------------------------------------------------
def init_params(key, B, K, D, R):
    ks = jax.random.split(key, 16)

    def unif(k, shape, fan_in):
        s = 1.0 / math.sqrt(fan_in)
        return jax.random.uniform(k, shape, jnp.float32, -s, s)

    p = {}
    p["Wmap_topk"] = unif(ks[0], (D, R), R)      # TopK_with_h.mapper Linear
    p["bmap_topk"] = unif(ks[1], (D,), R)
    p["Wm"] = unif(ks[2], (D, R), R)             # SEM.mapper Linear
    p["bm"] = unif(ks[3], (D,), R)
    p["Wi"] = unif(ks[4], (D, R), R)             # SEM.init_mapping Linear
    p["bi"] = unif(ks[5], (D,), R)
    p["GCN_init_mapping"] = unif(ks[6], (1, D), D)
    p["A_static"] = unif(ks[7], (K, K), K)
    p["evolve_A"] = unif(ks[8], (B, K, K), K)
    Wg = [unif(ks[9 + 2 * i], (K, D), D) for i in range(3)]    # Wu, Wr, Wh
    Ug = [unif(ks[10 + 2 * i], (K, K), K) for i in range(3)]   # Uu, Ur, Uh
    p["Wcat"] = jnp.concatenate(Wg, axis=0)          # [Wu;Wr;Wh]  (3K, D)
    p["Ucat"] = jnp.concatenate(Ug[:2], axis=0)      # [Uu;Ur]     (2K, K)
    p["Uh"] = Ug[2]                                  # Uh          (K, K)
    p["bcat"] = jnp.zeros((3 * K, K), jnp.float32)   # biases initialized to zeros
    return p


if __name__ == "__main__":
    # batch, graph nodes, gcn_dim, rnn_dim, top-k, words
    B, N, D, R, K, L = 4, 16, 32, 32, 8, 8
    STORAGE_DTYPE = jnp.bfloat16   # large streamed tensors; weights/state stay f32

    key = jax.random.PRNGKey(0)
    k_adj, k_ne, k_w, k_m, k_h, k_p = jax.random.split(key, 6)

    Adj = jax.random.uniform(k_adj, (B, N, N), jnp.float32, 0.1, 1.0).astype(STORAGE_DTYPE)
    node_embs = jax.random.normal(k_ne, (B, N, D), jnp.float32).astype(STORAGE_DTYPE)
    word_feats = jax.random.normal(k_w, (B, L, R), jnp.float32).astype(STORAGE_DTYPE)
    mask = (jax.random.uniform(k_m, (B, N)) < 0.25).astype(jnp.float32)
    ht = jax.random.normal(k_h, (B, R), jnp.float32)

    params = init_params(k_p, B, K, D, R)

    fwd = jax.jit(functools.partial(sem_forward, params, gcn_topk=K))
    node_out, policy_score, scorer, entropy, A_final = fwd(
        Adj, node_embs, word_feats, mask, ht)
    jax.block_until_ready((node_out, policy_score, scorer, entropy, A_final))

    assert node_out.shape == (B, K, D)
    assert policy_score.shape == (B,)
    assert scorer.shape == (B, D)
    assert entropy.shape == (B,)
    assert A_final.shape == (B, K, K)
    assert bool(jnp.all(jnp.isfinite(node_out)))
    print("KERNEL_OK")
</pallas_src>

<mosaic_0001>
module attributes {stable_mosaic.version = 11 : i64} {
  func.func @_score_kernel(%arg0: i32, %arg1: memref<2x1x32xf32, #tpu.memory_space<vmem>>, %arg2: memref<32x32xf32, #tpu.memory_space<vmem>>, %arg3: memref<1x32xf32, #tpu.memory_space<vmem>>, %arg4: memref<2x16x32xbf16, #tpu.memory_space<vmem>>, %arg5: memref<2x1x16xf32, #tpu.memory_space<vmem>>, %arg6: memref<2x1x16xf32, #tpu.memory_space<vmem>>, %arg7: memref<2x1x32xf32, #tpu.memory_space<vmem>>) attributes {dimension_semantics = [#tpu.dimension_semantics<parallel>], iteration_bounds = array<i64: 2>, scalar_prefetch = 0 : i64, scratch_operands = 0 : i64, tpu.core_type = #tpu.core_type<tc>, window_params = [{transform_indices = @transform_0, window_bounds = array<i64: 2, 1, 32>}, {pipeline_mode = #tpu.pipeline_mode<synchronous>, transform_indices = @transform_1, window_bounds = array<i64: 32, 32>}, {pipeline_mode = #tpu.pipeline_mode<synchronous>, transform_indices = @transform_2, window_bounds = array<i64: 1, 32>}, {transform_indices = @transform_3, window_bounds = array<i64: 2, 16, 32>}, {transform_indices = @transform_4, window_bounds = array<i64: 2, 1, 16>}, {transform_indices = @transform_5, window_bounds = array<i64: 2, 1, 16>}, {transform_indices = @transform_6, window_bounds = array<i64: 2, 1, 32>}]} {
    %c0 = arith.constant 0 : index
    %c0_0 = arith.constant 0 : index
    %0 = vector.load %arg2[%c0, %c0_0] : memref<32x32xf32, #tpu.memory_space<vmem>>, vector<32x32xf32>
    %c0_1 = arith.constant 0 : index
    %c0_2 = arith.constant 0 : index
    %1 = vector.load %arg3[%c0_1, %c0_2] : memref<1x32xf32, #tpu.memory_space<vmem>>, vector<1x32xf32>
    %c0_3 = arith.constant 0 : index
    %c0_4 = arith.constant 0 : index
    %c0_5 = arith.constant 0 : index
    %2 = vector.load %arg1[%c0_3, %c0_4, %c0_5] : memref<2x1x32xf32, #tpu.memory_space<vmem>>, vector<1x1x32xf32>
    %3 = vector.shape_cast %2 : vector<1x1x32xf32> to vector<1x32xf32>
    %cst = arith.constant dense<0.000000e+00> : vector<1x32xf32>
    %4 = tpu.matmul %3, %0, %cst {dimension_numbers = #tpu.dot_dimension_numbers<[1], [1], [0], [0], [0, 0, 1, 0], [], []>} : vector<1x32xf32>, vector<32x32xf32>, vector<1x32xf32> -> vector<1x32xf32>
    %5 = arith.addf %4, %1 : vector<1x32xf32>
    %6 = math.tanh %5 : vector<1x32xf32>
    %7 = arith.truncf %6 : vector<1x32xf32> to vector<1x32xbf16>
    %c0_6 = arith.constant 0 : index
    %c0_7 = arith.constant 0 : index
    %c0_8 = arith.constant 0 : index
    %8 = vector.load %arg4[%c0_6, %c0_7, %c0_8] : memref<2x16x32xbf16, #tpu.memory_space<vmem>>, vector<1x16x32xbf16>
    %9 = vector.shape_cast %8 : vector<1x16x32xbf16> to vector<16x32xbf16>
    %cst_9 = arith.constant dense<0.000000e+00> : vector<1x16xf32>
    %10 = tpu.matmul %7, %9, %cst_9 {dimension_numbers = #tpu.dot_dimension_numbers<[1], [1], [0], [0], [0, 0, 1, 0], [], []>} : vector<1x32xbf16>, vector<16x32xbf16>, vector<1x16xf32> -> vector<1x16xf32>
    %11 = arith.mulf %6, %6 : vector<1x32xf32>
    %12 = vector.shape_cast %11 : vector<1x32xf32> to vector<1x1x32xf32>
    %cst_10 = arith.constant dense<0.000000e+00> : vector<1xf32>
    %13 = vector.multi_reduction <add>, %12, %cst_10 [1, 2] : vector<1x1x32xf32> to vector<1xf32>
    %14 = vector.shape_cast %13 : vector<1xf32> to vector<1x1x1xf32>
    %15 = vector.extract %14[0, 0, 0] : f32 from vector<1x1x1xf32>
    %cst_11 = arith.constant 9.99999996E-13 : f32
    %16 = arith.addf %15, %cst_11 : f32
    %17 = math.rsqrt %16 : f32
    %18 = vector.broadcast %17 : f32 to vector<1x16xf32>
    %19 = arith.mulf %10, %18 : vector<1x16xf32>
    %c0_12 = arith.constant 0 : index
    %c0_13 = arith.constant 0 : index
    %c0_14 = arith.constant 0 : index
    %20 = vector.load %arg5[%c0_12, %c0_13, %c0_14] : memref<2x1x16xf32, #tpu.memory_space<vmem>>, vector<1x1x16xf32>
    %21 = vector.shape_cast %20 : vector<1x1x16xf32> to vector<1x16xf32>
    %cst_15 = arith.constant 5.000000e-01 : f32
    %22 = vector.broadcast %cst_15 : f32 to vector<1x16xf32>
    %23 = arith.cmpf ogt, %21, %22 : vector<1x16xf32>
    %cst_16 = arith.constant 9.99999971E-10 : f32
    %24 = vector.broadcast %cst_16 : f32 to vector<1x16xf32>
    %25 = arith.select %23, %24, %19 : vector<1x16xi1>, vector<1x16xf32>
    %c0_17 = arith.constant 0 : index
    %c0_18 = arith.constant 0 : index
    %c0_19 = arith.constant 0 : index
    %26 = vector.load %arg6[%c0_17, %c0_18, %c0_19] : memref<2x1x16xf32, #tpu.memory_space<vmem>>, vector<1x1x16xf32>
    %27 = vector.shape_cast %26 : vector<1x1x16xf32> to vector<1x16xf32>
    %28 = vector.shape_cast %25 : vector<1x16xf32> to vector<1x1x16xf32>
    tpu.vector_store %arg6[%c0_17, %c0_18, %c0_19], %28 {strides = array<i32>} : memref<2x1x16xf32, #tpu.memory_space<vmem>>, vector<1x1x16xf32>,
    %c0_20 = arith.constant 0 : index
    %c0_21 = arith.constant 0 : index
    %c0_22 = arith.constant 0 : index
    %29 = vector.load %arg7[%c0_20, %c0_21, %c0_22] : memref<2x1x32xf32, #tpu.memory_space<vmem>>, vector<1x1x32xf32>
    %30 = vector.shape_cast %29 : vector<1x1x32xf32> to vector<1x32xf32>
    %31 = vector.shape_cast %6 : vector<1x32xf32> to vector<1x1x32xf32>
    tpu.vector_store %arg7[%c0_20, %c0_21, %c0_22], %31 {strides = array<i32>} : memref<2x1x32xf32, #tpu.memory_space<vmem>>, vector<1x1x32xf32>,
    %c1 = arith.constant 1 : index
    %c0_23 = arith.constant 0 : index
    %c0_24 = arith.constant 0 : index
    %32 = vector.load %arg1[%c1, %c0_23, %c0_24] : memref<2x1x32xf32, #tpu.memory_space<vmem>>, vector<1x1x32xf32>
    %33 = vector.shape_cast %32 : vector<1x1x32xf32> to vector<1x32xf32>
    %cst_25 = arith.constant dense<0.000000e+00> : vector<1x32xf32>
    %34 = tpu.matmul %33, %0, %cst_25 {dimension_numbers = #tpu.dot_dimension_numbers<[1], [1], [0], [0], [0, 0, 1, 0], [], []>} : vector<1x32xf32>, vector<32x32xf32>, vector<1x32xf32> -> vector<1x32xf32>
    %35 = arith.addf %34, %1 : vector<1x32xf32>
    %36 = math.tanh %35 : vector<1x32xf32>
    %37 = arith.truncf %36 : vector<1x32xf32> to vector<1x32xbf16>
    %c1_26 = arith.constant 1 : index
    %c0_27 = arith.constant 0 : index
    %c0_28 = arith.constant 0 : index
    %38 = vector.load %arg4[%c1_26, %c0_27, %c0_28] : memref<2x16x32xbf16, #tpu.memory_space<vmem>>, vector<1x16x32xbf16>
    %39 = vector.shape_cast %38 : vector<1x16x32xbf16> to vector<16x32xbf16>
    %cst_29 = arith.constant dense<0.000000e+00> : vector<1x16xf32>
    %40 = tpu.matmul %37, %39, %cst_29 {dimension_numbers = #tpu.dot_dimension_numbers<[1], [1], [0], [0], [0, 0, 1, 0], [], []>} : vector<1x32xbf16>, vector<16x32xbf16>, vector<1x16xf32> -> vector<1x16xf32>
    %41 = arith.mulf %36, %36 : vector<1x32xf32>
    %42 = vector.shape_cast %41 : vector<1x32xf32> to vector<1x1x32xf32>
    %cst_30 = arith.constant dense<0.000000e+00> : vector<1xf32>
    %43 = vector.multi_reduction <add>, %42, %cst_30 [1, 2] : vector<1x1x32xf32> to vector<1xf32>
    %44 = vector.shape_cast %43 : vector<1xf32> to vector<1x1x1xf32>
    %45 = vector.extract %44[0, 0, 0] : f32 from vector<1x1x1xf32>
    %cst_31 = arith.constant 9.99999996E-13 : f32
    %46 = arith.addf %45, %cst_31 : f32
    %47 = math.rsqrt %46 : f32
    %48 = vector.broadcast %47 : f32 to vector<1x16xf32>
    %49 = arith.mulf %40, %48 : vector<1x16xf32>
    %c1_32 = arith.constant 1 : index
    %c0_33 = arith.constant 0 : index
    %c0_34 = arith.constant 0 : index
    %50 = vector.load %arg5[%c1_32, %c0_33, %c0_34] : memref<2x1x16xf32, #tpu.memory_space<vmem>>, vector<1x1x16xf32>
    %51 = vector.shape_cast %50 : vector<1x1x16xf32> to vector<1x16xf32>
    %cst_35 = arith.constant 5.000000e-01 : f32
    %52 = vector.broadcast %cst_35 : f32 to vector<1x16xf32>
    %53 = arith.cmpf ogt, %51, %52 : vector<1x16xf32>
    %cst_36 = arith.constant 9.99999971E-10 : f32
    %54 = vector.broadcast %cst_36 : f32 to vector<1x16xf32>
    %55 = arith.select %53, %54, %49 : vector<1x16xi1>, vector<1x16xf32>
    %c1_37 = arith.constant 1 : index
    %c0_38 = arith.constant 0 : index
    %c0_39 = arith.constant 0 : index
    %56 = vector.load %arg6[%c1_37, %c0_38, %c0_39] : memref<2x1x16xf32, #tpu.memory_space<vmem>>, vector<1x1x16xf32>
    %57 = vector.shape_cast %56 : vector<1x1x16xf32> to vector<1x16xf32>
    %58 = vector.shape_cast %55 : vector<1x16xf32> to vector<1x1x16xf32>
    tpu.vector_store %arg6[%c1_37, %c0_38, %c0_39], %58 {strides = array<i32>} : memref<2x1x16xf32, #tpu.memory_space<vmem>>, vector<1x1x16xf32>,
    %c1_40 = arith.constant 1 : index
    %c0_41 = arith.constant 0 : index
    %c0_42 = arith.constant 0 : index
    %59 = vector.load %arg7[%c1_40, %c0_41, %c0_42] : memref<2x1x32xf32, #tpu.memory_space<vmem>>, vector<1x1x32xf32>
    %60 = vector.shape_cast %59 : vector<1x1x32xf32> to vector<1x32xf32>
    %61 = vector.shape_cast %36 : vector<1x32xf32> to vector<1x1x32xf32>
    tpu.vector_store %arg7[%c1_40, %c0_41, %c0_42], %61 {strides = array<i32>} : memref<2x1x32xf32, #tpu.memory_space<vmem>>, vector<1x1x32xf32>,
    return
  }
  func.func @transform_0(%arg0: i32) -> (i32, i32, i32) {
    %c0_i32 = arith.constant 0 : i32
    %c0_i32_0 = arith.constant 0 : i32
    %c0_i32_1 = arith.constant 0 : i32
    return %arg0, %c0_i32, %c0_i32_0 : i32, i32, i32
  }
  func.func @transform_1(%arg0: i32) -> (i32, i32) {
    %c0_i32 = arith.constant 0 : i32
    %c0_i32_0 = arith.constant 0 : i32
    %c0_i32_1 = arith.constant 0 : i32
    return %c0_i32, %c0_i32_0 : i32, i32
  }
  func.func @transform_2(%arg0: i32) -> (i32, i32) {
    %c0_i32 = arith.constant 0 : i32
    %c0_i32_0 = arith.constant 0 : i32
    %c0_i32_1 = arith.constant 0 : i32
    return %c0_i32, %c0_i32_0 : i32, i32
  }
  func.func @transform_3(%arg0: i32) -> (i32, i32, i32) {
    %c0_i32 = arith.constant 0 : i32
    %c0_i32_0 = arith.constant 0 : i32
    %c0_i32_1 = arith.constant 0 : i32
    return %arg0, %c0_i32, %c0_i32_0 : i32, i32, i32
  }
  func.func @transform_4(%arg0: i32) -> (i32, i32, i32) {
    %c0_i32 = arith.constant 0 : i32
    %c0_i32_0 = arith.constant 0 : i32
    %c0_i32_1 = arith.constant 0 : i32
    return %arg0, %c0_i32, %c0_i32_0 : i32, i32, i32
  }
  func.func @transform_5(%arg0: i32) -> (i32, i32, i32) {
    %c0_i32 = arith.constant 0 : i32
    %c0_i32_0 = arith.constant 0 : i32
    %c0_i32_1 = arith.constant 0 : i32
    return %arg0, %c0_i32, %c0_i32_0 : i32, i32, i32
  }
  func.func @transform_6(%arg0: i32) -> (i32, i32, i32) {
    %c0_i32 = arith.constant 0 : i32
    %c0_i32_0 = arith.constant 0 : i32
    %c0_i32_1 = arith.constant 0 : i32
    return %arg0, %c0_i32, %c0_i32_0 : i32, i32, i32
  }
}

module attributes {stable_mosaic.version = 11 : i64} {
  func.func @_fused_kernel(%arg0: i32, %arg1: memref<32xi32, #tpu.memory_space<smem>>, %arg2: memref<2x8x1xf32, #tpu.memory_space<vmem>>, %arg3: memref<2x16x32xbf16, #tpu.memory_space<vmem>>, %arg4: memref<2x16x16xbf16, #tpu.memory_space<vmem>>, %arg5: memref<2x8x32xbf16, #tpu.memory_space<vmem>>, %arg6: memref<2x1x32xf32, #tpu.memory_space<vmem>>, %arg7: memref<2x8x8xf32, #tpu.memory_space<vmem>>, %arg8: memref<24x32xf32, #tpu.memory_space<vmem>>, %arg9: memref<16x8xf32, #tpu.memory_space<vmem>>, %arg10: memref<8x8xf32, #tpu.memory_space<vmem>>, %arg11: memref<24x8xf32, #tpu.memory_space<vmem>>, %arg12: memref<32x32xf32, #tpu.memory_space<vmem>>, %arg13: memref<1x32xf32, #tpu.memory_space<vmem>>, %arg14: memref<32x32xf32, #tpu.memory_space<vmem>>, %arg15: memref<1x32xf32, #tpu.memory_space<vmem>>, %arg16: memref<1x32xf32, #tpu.memory_space<vmem>>, %arg17: memref<8x8xf32, #tpu.memory_space<vmem>>, %arg18: memref<2x8x32xf32, #tpu.memory_space<vmem>>, %arg19: memref<2x8x8xf32, #tpu.memory_space<vmem>>) attributes {dimension_semantics = [#tpu.dimension_semantics<parallel>], iteration_bounds = array<i64: 2>, scalar_prefetch = 1 : i64, scratch_operands = 0 : i64, tpu.core_type = #tpu.core_type<tc>, window_params = [{transform_indices = @transform_0, window_bounds = array<i64: 2, 8, 1>}, {transform_indices = @transform_1, window_bounds = array<i64: 2, 16, 32>}, {transform_indices = @transform_2, window_bounds = array<i64: 2, 16, 16>}, {transform_indices = @transform_3, window_bounds = array<i64: 2, 8, 32>}, {transform_indices = @transform_4, window_bounds = array<i64: 2, 1, 32>}, {transform_indices = @transform_5, window_bounds = array<i64: 2, 8, 8>}, {pipeline_mode = #tpu.pipeline_mode<synchronous>, transform_indices = @transform_6, window_bounds = array<i64: 24, 32>}, {pipeline_mode = #tpu.pipeline_mode<synchronous>, transform_indices = @transform_7, window_bounds = array<i64: 16, 8>}, {pipeline_mode = #tpu.pipeline_mode<synchronous>, transform_indices = @transform_8, window_bounds = array<i64: 8, 8>}, {pipeline_mode = #tpu.pipeline_mode<synchronous>, transform_indices = @transform_9, window_bounds = array<i64: 24, 8>}, {pipeline_mode = #tpu.pipeline_mode<synchronous>, transform_indices = @transform_10, window_bounds = array<i64: 32, 32>}, {pipeline_mode = #tpu.pipeline_mode<synchronous>, transform_indices = @transform_11, window_bounds = array<i64: 1, 32>}, {pipeline_mode = #tpu.pipeline_mode<synchronous>, transform_indices = @transform_12, window_bounds = array<i64: 32, 32>}, {pipeline_mode = #tpu.pipeline_mode<synchronous>, transform_indices = @transform_13, window_bounds = array<i64: 1, 32>}, {pipeline_mode = #tpu.pipeline_mode<synchronous>, transform_indices = @transform_14, window_bounds = array<i64: 1, 32>}, {pipeline_mode = #tpu.pipeline_mode<synchronous>, transform_indices = @transform_15, window_bounds = array<i64: 8, 8>}, {transform_indices = @transform_16, window_bounds = array<i64: 2, 8, 32>}, {transform_indices = @transform_17, window_bounds = array<i64: 2, 8, 8>}]} {
    %c0 = arith.constant 0 : index
    %c0_0 = arith.constant 0 : index
    %0 = vector.load %arg8[%c0, %c0_0] : memref<24x32xf32, #tpu.memory_space<vmem>>, vector<24x32xf32>
    %c0_1 = arith.constant 0 : index
    %c0_2 = arith.constant 0 : index
    %1 = vector.load %arg9[%c0_1, %c0_2] : memref<16x8xf32, #tpu.memory_space<vmem>>, vector<16x8xf32>
    %c0_3 = arith.constant 0 : index
    %c0_4 = arith.constant 0 : index
    %2 = vector.load %arg10[%c0_3, %c0_4] : memref<8x8xf32, #tpu.memory_space<vmem>>, vector<8x8xf32>
    %c0_5 = arith.constant 0 : index
    %c0_6 = arith.constant 0 : index
    %3 = vector.load %arg11[%c0_5, %c0_6] : memref<24x8xf32, #tpu.memory_space<vmem>>, vector<24x8xf32>
    %c0_7 = arith.constant 0 : index
    %c0_8 = arith.constant 0 : index
    %4 = vector.load %arg12[%c0_7, %c0_8] : memref<32x32xf32, #tpu.memory_space<vmem>>, vector<32x32xf32>
    %c0_9 = arith.constant 0 : index
    %c0_10 = arith.constant 0 : index
    %5 = vector.load %arg13[%c0_9, %c0_10] : memref<1x32xf32, #tpu.memory_space<vmem>>, vector<1x32xf32>
    %c0_11 = arith.constant 0 : index
    %c0_12 = arith.constant 0 : index
    %6 = vector.load %arg14[%c0_11, %c0_12] : memref<32x32xf32, #tpu.memory_space<vmem>>, vector<32x32xf32>
    %c0_13 = arith.constant 0 : index
    %c0_14 = arith.constant 0 : index
    %7 = vector.load %arg15[%c0_13, %c0_14] : memref<1x32xf32, #tpu.memory_space<vmem>>, vector<1x32xf32>
    %c0_15 = arith.constant 0 : index
    %c0_16 = arith.constant 0 : index
    %8 = vector.load %arg16[%c0_15, %c0_16] : memref<1x32xf32, #tpu.memory_space<vmem>>, vector<1x32xf32>
    %c0_17 = arith.constant 0 : index
    %c0_18 = arith.constant 0 : index
    %9 = vector.load %arg17[%c0_17, %c0_18] : memref<8x8xf32, #tpu.memory_space<vmem>>, vector<8x8xf32>
    %10 = tpu.iota {dimensions = array<i32: 1>} : vector<8x16xi32>
    %11 = tpu.iota {dimensions = array<i32: 0>} : vector<8x16xi32>
    %c2_i32 = arith.constant 2 : i32
    %12 = arith.muli %arg0, %c2_i32 : i32
    %c0_i32 = arith.constant 0 : i32
    %13 = arith.addi %12, %c0_i32 : i32
    %c8_i32 = arith.constant 8 : i32
    %14 = arith.muli %13, %c8_i32 : i32
    %cst = arith.constant 0.000000e+00 : f32
    %15 = vector.broadcast %cst : f32 to vector<8x16xf32>
    %c0_i32_19 = arith.constant 0 : i32
    %16 = vector.broadcast %c0_i32_19 : i32 to vector<8x16xi32>
    %17 = arith.cmpi eq, %11, %16 : vector<8x16xi32>
    %c0_i32_20 = arith.constant 0 : i32
    %18 = arith.addi %14, %c0_i32_20 : i32
    %19 = arith.index_cast %18 : i32 to index
    %20 = memref.load %arg1[%19] : memref<32xi32, #tpu.memory_space<smem>>
    %21 = vector.broadcast %20 : i32 to vector<8x16xi32>
    %22 = arith.cmpi eq, %10, %21 : vector<8x16xi32>
    %23 = arith.andi %17, %22 : vector<8x16xi1>
    %cst_21 = arith.constant 1.000000e+00 : f32
    %24 = vector.broadcast %cst_21 : f32 to vector<8x16xf32>
    %25 = arith.select %23, %24, %15 : vector<8x16xi1>, vector<8x16xf32>
    %c1_i32 = arith.constant 1 : i32
    %26 = vector.broadcast %c1_i32 : i32 to vector<8x16xi32>
    %27 = arith.cmpi eq, %11, %26 : vector<8x16xi32>
    %c1_i32_22 = arith.constant 1 : i32
    %28 = arith.addi %14, %c1_i32_22 : i32
    %29 = arith.index_cast %28 : i32 to index
    %30 = memref.load %arg1[%29] : memref<32xi32, #tpu.memory_space<smem>>
    %31 = vector.broadcast %30 : i32 to vector<8x16xi32>
    %32 = arith.cmpi eq, %10, %31 : vector<8x16xi32>
    %33 = arith.andi %27, %32 : vector<8x16xi1>
    %cst_23 = arith.constant 1.000000e+00 : f32
    %34 = vector.broadcast %cst_23 : f32 to vector<8x16xf32>
    %35 = arith.select %33, %34, %25 : vector<8x16xi1>, vector<8x16xf32>
    %c2_i32_24 = arith.constant 2 : i32
    %36 = vector.broadcast %c2_i32_24 : i32 to vector<8x16xi32>
    %37 = arith.cmpi eq, %11, %36 : vector<8x16xi32>
    %c2_i32_25 = arith.constant 2 : i32
    %38 = arith.addi %14, %c2_i32_25 : i32
    %39 = arith.index_cast %38 : i32 to index
    %40 = memref.load %arg1[%39] : memref<32xi32, #tpu.memory_space<smem>>
    %41 = vector.broadcast %40 : i32 to vector<8x16xi32>
    %42 = arith.cmpi eq, %10, %41 : vector<8x16xi32>
    %43 = arith.andi %37, %42 : vector<8x16xi1>
    %cst_26 = arith.constant 1.000000e+00 : f32
    %44 = vector.broadcast %cst_26 : f32 to vector<8x16xf32>
    %45 = arith.select %43, %44, %35 : vector<8x16xi1>, vector<8x16xf32>
    %c3_i32 = arith.constant 3 : i32
    %46 = vector.broadcast %c3_i32 : i32 to vector<8x16xi32>
    %47 = arith.cmpi eq, %11, %46 : vector<8x16xi32>
    %c3_i32_27 = arith.constant 3 : i32
    %48 = arith.addi %14, %c3_i32_27 : i32
    %49 = arith.index_cast %48 : i32 to index
    %50 = memref.load %arg1[%49] : memref<32xi32, #tpu.memory_space<smem>>
    %51 = vector.broadcast %50 : i32 to vector<8x16xi32>
    %52 = arith.cmpi eq, %10, %51 : vector<8x16xi32>
    %53 = arith.andi %47, %52 : vector<8x16xi1>
    %cst_28 = arith.constant 1.000000e+00 : f32
    %54 = vector.broadcast %cst_28 : f32 to vector<8x16xf32>
    %55 = arith.select %53, %54, %45 : vector<8x16xi1>, vector<8x16xf32>
    %c4_i32 = arith.constant 4 : i32
    %56 = vector.broadcast %c4_i32 : i32 to vector<8x16xi32>
    %57 = arith.cmpi eq, %11, %56 : vector<8x16xi32>
    %c4_i32_29 = arith.constant 4 : i32
    %58 = arith.addi %14, %c4_i32_29 : i32
    %59 = arith.index_cast %58 : i32 to index
    %60 = memref.load %arg1[%59] : memref<32xi32, #tpu.memory_space<smem>>
    %61 = vector.broadcast %60 : i32 to vector<8x16xi32>
    %62 = arith.cmpi eq, %10, %61 : vector<8x16xi32>
    %63 = arith.andi %57, %62 : vector<8x16xi1>
    %cst_30 = arith.constant 1.000000e+00 : f32
    %64 = vector.broadcast %cst_30 : f32 to vector<8x16xf32>
    %65 = arith.select %63, %64, %55 : vector<8x16xi1>, vector<8x16xf32>
    %c5_i32 = arith.constant 5 : i32
    %66 = vector.broadcast %c5_i32 : i32 to vector<8x16xi32>
    %67 = arith.cmpi eq, %11, %66 : vector<8x16xi32>
    %c5_i32_31 = arith.constant 5 : i32
    %68 = arith.addi %14, %c5_i32_31 : i32
    %69 = arith.index_cast %68 : i32 to index
    %70 = memref.load %arg1[%69] : memref<32xi32, #tpu.memory_space<smem>>
    %71 = vector.broadcast %70 : i32 to vector<8x16xi32>
    %72 = arith.cmpi eq, %10, %71 : vector<8x16xi32>
    %73 = arith.andi %67, %72 : vector<8x16xi1>
    %cst_32 = arith.constant 1.000000e+00 : f32
    %74 = vector.broadcast %cst_32 : f32 to vector<8x16xf32>
    %75 = arith.select %73, %74, %65 : vector<8x16xi1>, vector<8x16xf32>
    %c6_i32 = arith.constant 6 : i32
    %76 = vector.broadcast %c6_i32 : i32 to vector<8x16xi32>
    %77 = arith.cmpi eq, %11, %76 : vector<8x16xi32>
    %c6_i32_33 = arith.constant 6 : i32
    %78 = arith.addi %14, %c6_i32_33 : i32
    %79 = arith.index_cast %78 : i32 to index
    %80 = memref.load %arg1[%79] : memref<32xi32, #tpu.memory_space<smem>>
    %81 = vector.broadcast %80 : i32 to vector<8x16xi32>
    %82 = arith.cmpi eq, %10, %81 : vector<8x16xi32>
    %83 = arith.andi %77, %82 : vector<8x16xi1>
    %cst_34 = arith.constant 1.000000e+00 : f32
    %84 = vector.broadcast %cst_34 : f32 to vector<8x16xf32>
    %85 = arith.select %83, %84, %75 : vector<8x16xi1>, vector<8x16xf32>
    %c7_i32 = arith.constant 7 : i32
    %86 = vector.broadcast %c7_i32 : i32 to vector<8x16xi32>
    %87 = arith.cmpi eq, %11, %86 : vector<8x16xi32>
    %c7_i32_35 = arith.constant 7 : i32
    %88 = arith.addi %14, %c7_i32_35 : i32
    %89 = arith.index_cast %88 : i32 to index
    %90 = memref.load %arg1[%89] : memref<32xi32, #tpu.memory_space<smem>>
    %91 = vector.broadcast %90 : i32 to vector<8x16xi32>
    %92 = arith.cmpi eq, %10, %91 : vector<8x16xi32>
    %93 = arith.andi %87, %92 : vector<8x16xi1>
    %cst_36 = arith.constant 1.000000e+00 : f32
    %94 = vector.broadcast %cst_36 : f32 to vector<8x16xf32>
    %95 = arith.select %93, %94, %85 : vector<8x16xi1>, vector<8x16xf32>
    %96 = arith.truncf %95 : vector<8x16xf32> to vector<8x16xbf16>
    %97 = arith.truncf %95 : vector<8x16xf32> to vector<8x16xbf16>
    %c0_37 = arith.constant 0 : index
    %c0_38 = arith.constant 0 : index
    %c0_39 = arith.constant 0 : index
    %98 = vector.load %arg3[%c0_37, %c0_38, %c0_39] : memref<2x16x32xbf16, #tpu.memory_space<vmem>>, vector<1x16x32xbf16>
    %99 = vector.shape_cast %98 : vector<1x16x32xbf16> to vector<16x32xbf16>
    %cst_40 = arith.constant dense<0.000000e+00> : vector<8x32xf32>
    %100 = tpu.matmul %96, %99, %cst_40 {dimension_numbers = #tpu.dot_dimension_numbers<[1], [0], [0], [1], [0, 0, 1, 1], [], []>} : vector<8x16xbf16>, vector<16x32xbf16>, vector<8x32xf32> -> vector<8x32xf32>
    %c0_41 = arith.constant 0 : index
    %c0_42 = arith.constant 0 : index
    %c0_43 = arith.constant 0 : index
    %101 = vector.load %arg4[%c0_41, %c0_42, %c0_43] : memref<2x16x16xbf16, #tpu.memory_space<vmem>>, vector<1x16x16xbf16>
    %102 = vector.shape_cast %101 : vector<1x16x16xbf16> to vector<16x16xbf16>
    %cst_44 = arith.constant dense<0.000000e+00> : vector<8x16xf32>
    %103 = tpu.matmul %97, %102, %cst_44 {dimension_numbers = #tpu.dot_dimension_numbers<[1], [0], [0], [1], [0, 0, 1, 1], [], []>} : vector<8x16xbf16>, vector<16x16xbf16>, vector<8x16xf32> -> vector<8x16xf32>
    %104 = arith.truncf %103 : vector<8x16xf32> to vector<8x16xbf16>
    %cst_45 = arith.constant dense<0.000000e+00> : vector<8x8xf32>
    %105 = tpu.matmul %104, %97, %cst_45 {dimension_numbers = #tpu.dot_dimension_numbers<[1], [1], [0], [0], [0, 0, 1, 0], [], []>} : vector<8x16xbf16>, vector<8x16xbf16>, vector<8x8xf32> -> vector<8x8xf32>
    %c0_46 = arith.constant 0 : index
    %c0_47 = arith.constant 0 : index
    %c0_48 = arith.constant 0 : index
    %106 = vector.load %arg2[%c0_46, %c0_47, %c0_48] : memref<2x8x1xf32, #tpu.memory_space<vmem>>, vector<1x8x1xf32>
    %107 = vector.shape_cast %106 : vector<1x8x1xf32> to vector<8x1xf32>
    %108 = math.tanh %107 : vector<8x1xf32>
    %109 = vector.broadcast %108 : vector<8x1xf32> to vector<8x32xf32>
    %110 = arith.mulf %100, %109 : vector<8x32xf32>
    %c0_49 = arith.constant 0 : index
    %c0_50 = arith.constant 0 : index
    %c0_51 = arith.constant 0 : index
    %111 = vector.load %arg7[%c0_49, %c0_50, %c0_51] : memref<2x8x8xf32, #tpu.memory_space<vmem>>, vector<1x8x8xf32>
    %112 = vector.shape_cast %111 : vector<1x8x8xf32> to vector<8x8xf32>
    %cst_52 = arith.constant dense<0.000000e+00> : vector<24x8xf32>
    %113 = tpu.matmul %0, %110, %cst_52 {dimension_numbers = #tpu.dot_dimension_numbers<[1], [1], [0], [0], [0, 0, 1, 0], [], []>} : vector<24x32xf32>, vector<8x32xf32>, vector<24x8xf32> -> vector<24x8xf32>
    %cst_53 = arith.constant dense<0.000000e+00> : vector<16x8xf32>
    %114 = tpu.matmul %1, %112, %cst_53 {dimension_numbers = #tpu.dot_dimension_numbers<[1], [0], [0], [1], [0, 0, 1, 1], [], []>} : vector<16x8xf32>, vector<8x8xf32>, vector<16x8xf32> -> vector<16x8xf32>
    %115 = vector.extract_strided_slice %113 {offsets = [0, 0], sizes = [8, 8], strides = [1, 1]} : vector<24x8xf32> to vector<8x8xf32>
    %116 = vector.extract_strided_slice %114 {offsets = [0, 0], sizes = [8, 8], strides = [1, 1]} : vector<16x8xf32> to vector<8x8xf32>
    %117 = arith.addf %115, %116 : vector<8x8xf32>
    %118 = vector.extract_strided_slice %3 {offsets = [0, 0], sizes = [8, 8], strides = [1, 1]} : vector<24x8xf32> to vector<8x8xf32>
    %119 = arith.addf %117, %118 : vector<8x8xf32>
    %120 = arith.negf %119 : vector<8x8xf32>
    %121 = math.exp %120 : vector<8x8xf32>
    %cst_54 = arith.constant 1.000000e+00 : f32
    %122 = vector.broadcast %cst_54 : f32 to vector<8x8xf32>
    %123 = arith.addf %122, %121 : vector<8x8xf32>
    %124 = arith.divf %122, %123 : vector<8x8xf32>
    %125 = vector.extract_strided_slice %113 {offsets = [8, 0], sizes = [8, 8], strides = [1, 1]} : vector<24x8xf32> to vector<8x8xf32>
    %126 = vector.extract_strided_slice %114 {offsets = [8, 0], sizes = [8, 8], strides = [1, 1]} : vector<16x8xf32> to vector<8x8xf32>
    %127 = arith.addf %125, %126 : vector<8x8xf32>
    %128 = vector.extract_strided_slice %3 {offsets = [8, 0], sizes = [8, 8], strides = [1, 1]} : vector<24x8xf32> to vector<8x8xf32>
    %129 = arith.addf %127, %128 : vector<8x8xf32>
    %130 = arith.negf %129 : vector<8x8xf32>
    %131 = math.exp %130 : vector<8x8xf32>
    %cst_55 = arith.constant 1.000000e+00 : f32
    %132 = vector.broadcast %cst_55 : f32 to vector<8x8xf32>
    %133 = arith.addf %132, %131 : vector<8x8xf32>
    %134 = arith.divf %132, %133 : vector<8x8xf32>
    %135 = vector.extract_strided_slice %113 {offsets = [16, 0], sizes = [8, 8], strides = [1, 1]} : vector<24x8xf32> to vector<8x8xf32>
    %136 = arith.mulf %134, %112 : vector<8x8xf32>
    %cst_56 = arith.constant dense<0.000000e+00> : vector<8x8xf32>
    %137 = tpu.matmul %2, %136, %cst_56 {dimension_numbers = #tpu.dot_dimension_numbers<[1], [0], [0], [1], [0, 0, 1, 1], [], []>} : vector<8x8xf32>, vector<8x8xf32>, vector<8x8xf32> -> vector<8x8xf32>
    %138 = arith.addf %135, %137 : vector<8x8xf32>
    %139 = vector.extract_strided_slice %3 {offsets = [16, 0], sizes = [8, 8], strides = [1, 1]} : vector<24x8xf32> to vector<8x8xf32>
    %140 = arith.addf %138, %139 : vector<8x8xf32>
    %141 = math.tanh %140 : vector<8x8xf32>
    %cst_57 = arith.constant 1.000000e+00 : f32
    %142 = vector.broadcast %cst_57 : f32 to vector<8x8xf32>
    %143 = arith.subf %142, %124 : vector<8x8xf32>
    %144 = arith.mulf %143, %112 : vector<8x8xf32>
    %145 = arith.mulf %124, %141 : vector<8x8xf32>
    %146 = arith.addf %144, %145 : vector<8x8xf32>
    %c0_58 = arith.constant 0 : index
    %c0_59 = arith.constant 0 : index
    %c0_60 = arith.constant 0 : index
    %147 = vector.load %arg5[%c0_58, %c0_59, %c0_60] : memref<2x8x32xbf16, #tpu.memory_space<vmem>>, vector<1x8x32xbf16>
    %148 = vector.shape_cast %147 : vector<1x8x32xbf16> to vector<8x32xbf16>
    %149 = arith.extf %148 : vector<8x32xbf16> to vector<8x32xf32>
    %cst_61 = arith.constant dense<0.000000e+00> : vector<8x32xf32>
    %150 = tpu.matmul %149, %4, %cst_61 {dimension_numbers = #tpu.dot_dimension_numbers<[1], [1], [0], [0], [0, 0, 1, 0], [], []>} : vector<8x32xf32>, vector<32x32xf32>, vector<8x32xf32> -> vector<8x32xf32>
    %151 = vector.broadcast %5 : vector<1x32xf32> to vector<8x32xf32>
    %152 = arith.addf %150, %151 : vector<8x32xf32>
    %cst_62 = arith.constant dense<0.000000e+00> : vector<8x8xf32>
    %153 = tpu.matmul %100, %152, %cst_62 {dimension_numbers = #tpu.dot_dimension_numbers<[1], [1], [0], [0], [0, 0, 1, 0], [], []>} : vector<8x32xf32>, vector<8x32xf32>, vector<8x8xf32> -> vector<8x8xf32>
    %cst_63 = arith.constant dense<0.000000e+00> : vector<8x8xf32>
    %154 = tpu.matmul %153, %153, %cst_63 {dimension_numbers = #tpu.dot_dimension_numbers<[1], [1], [0], [0], [0, 0, 1, 0], [], []>} : vector<8x8xf32>, vector<8x8xf32>, vector<8x8xf32> -> vector<8x8xf32>
    %cst_64 = arith.constant dense<0.000000e+00> : vector<8xf32>
    %155 = vector.multi_reduction <add>, %105, %cst_64 [0] : vector<8x8xf32> to vector<8xf32>
    %156 = vector.shape_cast %155 : vector<8xf32> to vector<1x8xf32>
    %cst_65 = arith.constant 0.000000e+00 : f32
    %157 = vector.broadcast %cst_65 : f32 to vector<1x8xf32>
    %158 = arith.cmpf ogt, %156, %157 : vector<1x8xf32>
    %159 = math.rsqrt %156 : vector<1x8xf32>
    %cst_66 = arith.constant 0.000000e+00 : f32
    %160 = vector.broadcast %cst_66 : f32 to vector<1x8xf32>
    %161 = arith.select %158, %159, %160 : vector<1x8xi1>, vector<1x8xf32>
    %162 = vector.broadcast %161 : vector<1x8xf32> to vector<8x8xf32>
    %163 = arith.mulf %162, %105 : vector<8x8xf32>
    %164 = tpu.transpose %161, [1, 0] : vector<1x8xf32> -> vector<8x1xf32>
    %165 = vector.broadcast %164 : vector<8x1xf32> to vector<8x8xf32>
    %166 = arith.mulf %163, %165 : vector<8x8xf32>
    %167 = arith.addf %146, %166 : vector<8x8xf32>
    %168 = arith.addf %167, %154 : vector<8x8xf32>
    %c0_67 = arith.constant 0 : index
    %c0_68 = arith.constant 0 : index
    %c0_69 = arith.constant 0 : index
    %169 = vector.load %arg6[%c0_67, %c0_68, %c0_69] : memref<2x1x32xf32, #tpu.memory_space<vmem>>, vector<1x1x32xf32>
    %170 = vector.shape_cast %169 : vector<1x1x32xf32> to vector<1x32xf32>
    %cst_70 = arith.constant dense<0.000000e+00> : vector<1x32xf32>
    %171 = tpu.matmul %170, %6, %cst_70 {dimension_numbers = #tpu.dot_dimension_numbers<[1], [1], [0], [0], [0, 0, 1, 0], [], []>} : vector<1x32xf32>, vector<32x32xf32>, vector<1x32xf32> -> vector<1x32xf32>
    %172 = arith.addf %171, %7 : vector<1x32xf32>
    %173 = math.tanh %172 : vector<1x32xf32>
    %cst_71 = arith.constant dense<0.000000e+00> : vector<8x1xf32>
    %174 = tpu.matmul %100, %173, %cst_71 {dimension_numbers = #tpu.dot_dimension_numbers<[1], [1], [0], [0], [0, 0, 1, 0], [], []>} : vector<8x32xf32>, vector<1x32xf32>, vector<8x1xf32> -> vector<8x1xf32>
    %cst_72 = arith.constant dense<0.000000e+00> : vector<8x1xf32>
    %175 = tpu.matmul %168, %174, %cst_72 {dimension_numbers = #tpu.dot_dimension_numbers<[1], [0], [0], [1], [0, 0, 1, 1], [], []>} : vector<8x8xf32>, vector<8x1xf32>, vector<8x1xf32> -> vector<8x1xf32>
    %176 = vector.broadcast %175 : vector<8x1xf32> to vector<8x32xf32>
    %177 = vector.broadcast %8 : vector<1x32xf32> to vector<8x32xf32>
    %178 = arith.mulf %176, %177 : vector<8x32xf32>
    %cst_73 = arith.constant 0.000000e+00 : f32
    %179 = vector.broadcast %cst_73 : f32 to vector<8x32xf32>
    %180 = arith.maximumf %178, %179 : vector<8x32xf32>
    %cst_74 = arith.constant dense<0.000000e+00> : vector<8x1xf32>
    %181 = tpu.matmul %9, %174, %cst_74 {dimension_numbers = #tpu.dot_dimension_numbers<[1], [0], [0], [1], [0, 0, 1, 1], [], []>} : vector<8x8xf32>, vector<8x1xf32>, vector<8x1xf32> -> vector<8x1xf32>
    %182 = vector.broadcast %181 : vector<8x1xf32> to vector<8x32xf32>
    %183 = vector.broadcast %8 : vector<1x32xf32> to vector<8x32xf32>
    %184 = arith.mulf %182, %183 : vector<8x32xf32>
    %cst_75 = arith.constant 0.000000e+00 : f32
    %185 = vector.broadcast %cst_75 : f32 to vector<8x32xf32>
    %186 = arith.maximumf %184, %185 : vector<8x32xf32>
    %187 = arith.addf %180, %186 : vector<8x32xf32>
    %cst_76 = arith.constant 5.000000e-01 : f32
    %188 = vector.broadcast %cst_76 : f32 to vector<8x32xf32>
    %189 = arith.mulf %187, %188 : vector<8x32xf32>
    %c0_77 = arith.constant 0 : index
    %c0_78 = arith.constant 0 : index
    %c0_79 = arith.constant 0 : index
    %190 = vector.load %arg18[%c0_77, %c0_78, %c0_79] : memref<2x8x32xf32, #tpu.memory_space<vmem>>, vector<1x8x32xf32>
    %191 = vector.shape_cast %190 : vector<1x8x32xf32> to vector<8x32xf32>
    %192 = vector.shape_cast %189 : vector<8x32xf32> to vector<1x8x32xf32>
    tpu.vector_store %arg18[%c0_77, %c0_78, %c0_79], %192 {strides = array<i32>} : memref<2x8x32xf32, #tpu.memory_space<vmem>>, vector<1x8x32xf32>,
    %c0_80 = arith.constant 0 : index
    %c0_81 = arith.constant 0 : index
    %c0_82 = arith.constant 0 : index
    %193 = vector.load %arg19[%c0_80, %c0_81, %c0_82] : memref<2x8x8xf32, #tpu.memory_space<vmem>>, vector<1x8x8xf32>
    %194 = vector.shape_cast %193 : vector<1x8x8xf32> to vector<8x8xf32>
    %195 = vector.shape_cast %168 : vector<8x8xf32> to vector<1x8x8xf32>
    tpu.vector_store %arg19[%c0_80, %c0_81, %c0_82], %195 {strides = array<i32>} : memref<2x8x8xf32, #tpu.memory_space<vmem>>, vector<1x8x8xf32>,
    %c2_i32_83 = arith.constant 2 : i32
    %196 = arith.muli %arg0, %c2_i32_83 : i32
    %c1_i32_84 = arith.constant 1 : i32
    %197 = arith.addi %196, %c1_i32_84 : i32
    %c8_i32_85 = arith.constant 8 : i32
    %198 = arith.muli %197, %c8_i32_85 : i32
    %cst_86 = arith.constant 0.000000e+00 : f32
    %199 = vector.broadcast %cst_86 : f32 to vector<8x16xf32>
    %c0_i32_87 = arith.constant 0 : i32
    %200 = vector.broadcast %c0_i32_87 : i32 to vector<8x16xi32>
    %201 = arith.cmpi eq, %11, %200 : vector<8x16xi32>
    %c0_i32_88 = arith.constant 0 : i32
    %202 = arith.addi %198, %c0_i32_88 : i32
    %203 = arith.index_cast %202 : i32 to index
    %204 = memref.load %arg1[%203] : memref<32xi32, #tpu.memory_space<smem>>
    %205 = vector.broadcast %204 : i32 to vector<8x16xi32>
    %206 = arith.cmpi eq, %10, %205 : vector<8x16xi32>
    %207 = arith.andi %201, %206 : vector<8x16xi1>
    %cst_89 = arith.constant 1.000000e+00 : f32
    %208 = vector.broadcast %cst_89 : f32 to vector<8x16xf32>
    %209 = arith.select %207, %208, %199 : vector<8x16xi1>, vector<8x16xf32>
    %c1_i32_90 = arith.constant 1 : i32
    %210 = vector.broadcast %c1_i32_90 : i32 to vector<8x16xi32>
    %211 = arith.cmpi eq, %11, %210 : vector<8x16xi32>
    %c1_i32_91 = arith.constant 1 : i32
    %212 = arith.addi %198, %c1_i32_91 : i32
    %213 = arith.index_cast %212 : i32 to index
    %214 = memref.load %arg1[%213] : memref<32xi32, #tpu.memory_space<smem>>
    %215 = vector.broadcast %214 : i32 to vector<8x16xi32>
    %216 = arith.cmpi eq, %10, %215 : vector<8x16xi32>
    %217 = arith.andi %211, %216 : vector<8x16xi1>
    %cst_92 = arith.constant 1.000000e+00 : f32
    %218 = vector.broadcast %cst_92 : f32 to vector<8x16xf32>
    %219 = arith.select %217, %218, %209 : vector<8x16xi1>, vector<8x16xf32>
    %c2_i32_93 = arith.constant 2 : i32
    %220 = vector.broadcast %c2_i32_93 : i32 to vector<8x16xi32>
    %221 = arith.cmpi eq, %11, %220 : vector<8x16xi32>
    %c2_i32_94 = arith.constant 2 : i32
    %222 = arith.addi %198, %c2_i32_94 : i32
    %223 = arith.index_cast %222 : i32 to index
    %224 = memref.load %arg1[%223] : memref<32xi32, #tpu.memory_space<smem>>
    %225 = vector.broadcast %224 : i32 to vector<8x16xi32>
    %226 = arith.cmpi eq, %10, %225 : vector<8x16xi32>
    %227 = arith.andi %221, %226 : vector<8x16xi1>
    %cst_95 = arith.constant 1.000000e+00 : f32
    %228 = vector.broadcast %cst_95 : f32 to vector<8x16xf32>
    %229 = arith.select %227, %228, %219 : vector<8x16xi1>, vector<8x16xf32>
    %c3_i32_96 = arith.constant 3 : i32
    %230 = vector.broadcast %c3_i32_96 : i32 to vector<8x16xi32>
    %231 = arith.cmpi eq, %11, %230 : vector<8x16xi32>
    %c3_i32_97 = arith.constant 3 : i32
    %232 = arith.addi %198, %c3_i32_97 : i32
    %233 = arith.index_cast %232 : i32 to index
    %234 = memref.load %arg1[%233] : memref<32xi32, #tpu.memory_space<smem>>
    %235 = vector.broadcast %234 : i32 to vector<8x16xi32>
    %236 = arith.cmpi eq, %10, %235 : vector<8x16xi32>
    %237 = arith.andi %231, %236 : vector<8x16xi1>
    %cst_98 = arith.constant 1.000000e+00 : f32
    %238 = vector.broadcast %cst_98 : f32 to vector<8x16xf32>
    %239 = arith.select %237, %238, %229 : vector<8x16xi1>, vector<8x16xf32>
    %c4_i32_99 = arith.constant 4 : i32
    %240 = vector.broadcast %c4_i32_99 : i32 to vector<8x16xi32>
    %241 = arith.cmpi eq, %11, %240 : vector<8x16xi32>
    %c4_i32_100 = arith.constant 4 : i32
    %242 = arith.addi %198, %c4_i32_100 : i32
    %243 = arith.index_cast %242 : i32 to index
    %244 = memref.load %arg1[%243] : memref<32xi32, #tpu.memory_space<smem>>
    %245 = vector.broadcast %244 : i32 to vector<8x16xi32>
    %246 = arith.cmpi eq, %10, %245 : vector<8x16xi32>
    %247 = arith.andi %241, %246 : vector<8x16xi1>
    %cst_101 = arith.constant 1.000000e+00 : f32
    %248 = vector.broadcast %cst_101 : f32 to vector<8x16xf32>
    %249 = arith.select %247, %248, %239 : vector<8x16xi1>, vector<8x16xf32>
    %c5_i32_102 = arith.constant 5 : i32
    %250 = vector.broadcast %c5_i32_102 : i32 to vector<8x16xi32>
    %251 = arith.cmpi eq, %11, %250 : vector<8x16xi32>
    %c5_i32_103 = arith.constant 5 : i32
    %252 = arith.addi %198, %c5_i32_103 : i32
    %253 = arith.index_cast %252 : i32 to index
    %254 = memref.load %arg1[%253] : memref<32xi32, #tpu.memory_space<smem>>
    %255 = vector.broadcast %254 : i32 to vector<8x16xi32>
    %256 = arith.cmpi eq, %10, %255 : vector<8x16xi32>
    %257 = arith.andi %251, %256 : vector<8x16xi1>
    %cst_104 = arith.constant 1.000000e+00 : f32
    %258 = vector.broadcast %cst_104 : f32 to vector<8x16xf32>
    %259 = arith.select %257, %258, %249 : vector<8x16xi1>, vector<8x16xf32>
    %c6_i32_105 = arith.constant 6 : i32
    %260 = vector.broadcast %c6_i32_105 : i32 to vector<8x16xi32>
    %261 = arith.cmpi eq, %11, %260 : vector<8x16xi32>
    %c6_i32_106 = arith.constant 6 : i32
    %262 = arith.addi %198, %c6_i32_106 : i32
    %263 = arith.index_cast %262 : i32 to index
    %264 = memref.load %arg1[%263] : memref<32xi32, #tpu.memory_space<smem>>
    %265 = vector.broadcast %264 : i32 to vector<8x16xi32>
    %266 = arith.cmpi eq, %10, %265 : vector<8x16xi32>
    %267 = arith.andi %261, %266 : vector<8x16xi1>
    %cst_107 = arith.constant 1.000000e+00 : f32
    %268 = vector.broadcast %cst_107 : f32 to vector<8x16xf32>
    %269 = arith.select %267, %268, %259 : vector<8x16xi1>, vector<8x16xf32>
    %c7_i32_108 = arith.constant 7 : i32
    %270 = vector.broadcast %c7_i32_108 : i32 to vector<8x16xi32>
    %271 = arith.cmpi eq, %11, %270 : vector<8x16xi32>
    %c7_i32_109 = arith.constant 7 : i32
    %272 = arith.addi %198, %c7_i32_109 : i32
    %273 = arith.index_cast %272 : i32 to index
    %274 = memref.load %arg1[%273] : memref<32xi32, #tpu.memory_space<smem>>
    %275 = vector.broadcast %274 : i32 to vector<8x16xi32>
    %276 = arith.cmpi eq, %10, %275 : vector<8x16xi32>
    %277 = arith.andi %271, %276 : vector<8x16xi1>
    %cst_110 = arith.constant 1.000000e+00 : f32
    %278 = vector.broadcast %cst_110 : f32 to vector<8x16xf32>
    %279 = arith.select %277, %278, %269 : vector<8x16xi1>, vector<8x16xf32>
    %280 = arith.truncf %279 : vector<8x16xf32> to vector<8x16xbf16>
    %281 = arith.truncf %279 : vector<8x16xf32> to vector<8x16xbf16>
    %c1 = arith.constant 1 : index
    %c0_111 = arith.constant 0 : index
    %c0_112 = arith.constant 0 : index
    %282 = vector.load %arg3[%c1, %c0_111, %c0_112] : memref<2x16x32xbf16, #tpu.memory_space<vmem>>, vector<1x16x32xbf16>
    %283 = vector.shape_cast %282 : vector<1x16x32xbf16> to vector<16x32xbf16>
    %cst_113 = arith.constant dense<0.000000e+00> : vector<8x32xf32>
    %284 = tpu.matmul %280, %283, %cst_113 {dimension_numbers = #tpu.dot_dimension_numbers<[1], [0], [0], [1], [0, 0, 1, 1], [], []>} : vector<8x16xbf16>, vector<16x32xbf16>, vector<8x32xf32> -> vector<8x32xf32>
    %c1_114 = arith.constant 1 : index
    %c0_115 = arith.constant 0 : index
    %c0_116 = arith.constant 0 : index
    %285 = vector.load %arg4[%c1_114, %c0_115, %c0_116] : memref<2x16x16xbf16, #tpu.memory_space<vmem>>, vector<1x16x16xbf16>
    %286 = vector.shape_cast %285 : vector<1x16x16xbf16> to vector<16x16xbf16>
    %cst_117 = arith.constant dense<0.000000e+00> : vector<8x16xf32>
    %287 = tpu.matmul %281, %286, %cst_117 {dimension_numbers = #tpu.dot_dimension_numbers<[1], [0], [0], [1], [0, 0, 1, 1], [], []>} : vector<8x16xbf16>, vector<16x16xbf16>, vector<8x16xf32> -> vector<8x16xf32>
    %288 = arith.truncf %287 : vector<8x16xf32> to vector<8x16xbf16>
    %cst_118 = arith.constant dense<0.000000e+00> : vector<8x8xf32>
    %289 = tpu.matmul %288, %281, %cst_118 {dimension_numbers = #tpu.dot_dimension_numbers<[1], [1], [0], [0], [0, 0, 1, 0], [], []>} : vector<8x16xbf16>, vector<8x16xbf16>, vector<8x8xf32> -> vector<8x8xf32>
    %c1_119 = arith.constant 1 : index
    %c0_120 = arith.constant 0 : index
    %c0_121 = arith.constant 0 : index
    %290 = vector.load %arg2[%c1_119, %c0_120, %c0_121] : memref<2x8x1xf32, #tpu.memory_space<vmem>>, vector<1x8x1xf32>
    %291 = vector.shape_cast %290 : vector<1x8x1xf32> to vector<8x1xf32>
    %292 = math.tanh %291 : vector<8x1xf32>
    %293 = vector.broadcast %292 : vector<8x1xf32> to vector<8x32xf32>
    %294 = arith.mulf %284, %293 : vector<8x32xf32>
    %c1_122 = arith.constant 1 : index
    %c0_123 = arith.constant 0 : index
    %c0_124 = arith.constant 0 : index
    %295 = vector.load %arg7[%c1_122, %c0_123, %c0_124] : memref<2x8x8xf32, #tpu.memory_space<vmem>>, vector<1x8x8xf32>
    %296 = vector.shape_cast %295 : vector<1x8x8xf32> to vector<8x8xf32>
    %cst_125 = arith.constant dense<0.000000e+00> : vector<24x8xf32>
    %297 = tpu.matmul %0, %294, %cst_125 {dimension_numbers = #tpu.dot_dimension_numbers<[1], [1], [0], [0], [0, 0, 1, 0], [], []>} : vector<24x32xf32>, vector<8x32xf32>, vector<24x8xf32> -> vector<24x8xf32>
    %cst_126 = arith.constant dense<0.000000e+00> : vector<16x8xf32>
    %298 = tpu.matmul %1, %296, %cst_126 {dimension_numbers = #tpu.dot_dimension_numbers<[1], [0], [0], [1], [0, 0, 1, 1], [], []>} : vector<16x8xf32>, vector<8x8xf32>, vector<16x8xf32> -> vector<16x8xf32>
    %299 = vector.extract_strided_slice %297 {offsets = [0, 0], sizes = [8, 8], strides = [1, 1]} : vector<24x8xf32> to vector<8x8xf32>
    %300 = vector.extract_strided_slice %298 {offsets = [0, 0], sizes = [8, 8], strides = [1, 1]} : vector<16x8xf32> to vector<8x8xf32>
    %301 = arith.addf %299, %300 : vector<8x8xf32>
    %302 = vector.extract_strided_slice %3 {offsets = [0, 0], sizes = [8, 8], strides = [1, 1]} : vector<24x8xf32> to vector<8x8xf32>
    %303 = arith.addf %301, %302 : vector<8x8xf32>
    %304 = arith.negf %303 : vector<8x8xf32>
    %305 = math.exp %304 : vector<8x8xf32>
    %cst_127 = arith.constant 1.000000e+00 : f32
    %306 = vector.broadcast %cst_127 : f32 to vector<8x8xf32>
    %307 = arith.addf %306, %305 : vector<8x8xf32>
    %308 = arith.divf %306, %307 : vector<8x8xf32>
    %309 = vector.extract_strided_slice %297 {offsets = [8, 0], sizes = [8, 8], strides = [1, 1]} : vector<24x8xf32> to vector<8x8xf32>
    %310 = vector.extract_strided_slice %298 {offsets = [8, 0], sizes = [8, 8], strides = [1, 1]} : vector<16x8xf32> to vector<8x8xf32>
    %311 = arith.addf %309, %310 : vector<8x8xf32>
    %312 = vector.extract_strided_slice %3 {offsets = [8, 0], sizes = [8, 8], strides = [1, 1]} : vector<24x8xf32> to vector<8x8xf32>
    %313 = arith.addf %311, %312 : vector<8x8xf32>
    %314 = arith.negf %313 : vector<8x8xf32>
    %315 = math.exp %314 : vector<8x8xf32>
    %cst_128 = arith.constant 1.000000e+00 : f32
    %316 = vector.broadcast %cst_128 : f32 to vector<8x8xf32>
    %317 = arith.addf %316, %315 : vector<8x8xf32>
    %318 = arith.divf %316, %317 : vector<8x8xf32>
    %319 = vector.extract_strided_slice %297 {offsets = [16, 0], sizes = [8, 8], strides = [1, 1]} : vector<24x8xf32> to vector<8x8xf32>
    %320 = arith.mulf %318, %296 : vector<8x8xf32>
    %cst_129 = arith.constant dense<0.000000e+00> : vector<8x8xf32>
    %321 = tpu.matmul %2, %320, %cst_129 {dimension_numbers = #tpu.dot_dimension_numbers<[1], [0], [0], [1], [0, 0, 1, 1], [], []>} : vector<8x8xf32>, vector<8x8xf32>, vector<8x8xf32> -> vector<8x8xf32>
    %322 = arith.addf %319, %321 : vector<8x8xf32>
    %323 = vector.extract_strided_slice %3 {offsets = [16, 0], sizes = [8, 8], strides = [1, 1]} : vector<24x8xf32> to vector<8x8xf32>
    %324 = arith.addf %322, %323 : vector<8x8xf32>
    %325 = math.tanh %324 : vector<8x8xf32>
    %cst_130 = arith.constant 1.000000e+00 : f32
    %326 = vector.broadcast %cst_130 : f32 to vector<8x8xf32>
    %327 = arith.subf %326, %308 : vector<8x8xf32>
    %328 = arith.mulf %327, %296 : vector<8x8xf32>
    %329 = arith.mulf %308, %325 : vector<8x8xf32>
    %330 = arith.addf %328, %329 : vector<8x8xf32>
    %c1_131 = arith.constant 1 : index
    %c0_132 = arith.constant 0 : index
    %c0_133 = arith.constant 0 : index
    %331 = vector.load %arg5[%c1_131, %c0_132, %c0_133] : memref<2x8x32xbf16, #tpu.memory_space<vmem>>, vector<1x8x32xbf16>
    %332 = vector.shape_cast %331 : vector<1x8x32xbf16> to vector<8x32xbf16>
    %333 = arith.extf %332 : vector<8x32xbf16> to vector<8x32xf32>
    %cst_134 = arith.constant dense<0.000000e+00> : vector<8x32xf32>
    %334 = tpu.matmul %333, %4, %cst_134 {dimension_numbers = #tpu.dot_dimension_numbers<[1], [1], [0], [0], [0, 0, 1, 0], [], []>} : vector<8x32xf32>, vector<32x32xf32>, vector<8x32xf32> -> vector<8x32xf32>
    %335 = vector.broadcast %5 : vector<1x32xf32> to vector<8x32xf32>
    %336 = arith.addf %334, %335 : vector<8x32xf32>
    %cst_135 = arith.constant dense<0.000000e+00> : vector<8x8xf32>
    %337 = tpu.matmul %284, %336, %cst_135 {dimension_numbers = #tpu.dot_dimension_numbers<[1], [1], [0], [0], [0, 0, 1, 0], [], []>} : vector<8x32xf32>, vector<8x32xf32>, vector<8x8xf32> -> vector<8x8xf32>
    %cst_136 = arith.constant dense<0.000000e+00> : vector<8x8xf32>
    %338 = tpu.matmul %337, %337, %cst_136 {dimension_numbers = #tpu.dot_dimension_numbers<[1], [1], [0], [0], [0, 0, 1, 0], [], []>} : vector<8x8xf32>, vector<8x8xf32>, vector<8x8xf32> -> vector<8x8xf32>
    %cst_137 = arith.constant dense<0.000000e+00> : vector<8xf32>
    %339 = vector.multi_reduction <add>, %289, %cst_137 [0] : vector<8x8xf32> to vector<8xf32>
    %340 = vector.shape_cast %339 : vector<8xf32> to vector<1x8xf32>
    %cst_138 = arith.constant 0.000000e+00 : f32
    %341 = vector.broadcast %cst_138 : f32 to vector<1x8xf32>
    %342 = arith.cmpf ogt, %340, %341 : vector<1x8xf32>
    %343 = math.rsqrt %340 : vector<1x8xf32>
    %cst_139 = arith.constant 0.000000e+00 : f32
    %344 = vector.broadcast %cst_139 : f32 to vector<1x8xf32>
    %345 = arith.select %342, %343, %344 : vector<1x8xi1>, vector<1x8xf32>
    %346 = vector.broadcast %345 : vector<1x8xf32> to vector<8x8xf32>
    %347 = arith.mulf %346, %289 : vector<8x8xf32>
    %348 = tpu.transpose %345, [1, 0] : vector<1x8xf32> -> vector<8x1xf32>
    %349 = vector.broadcast %348 : vector<8x1xf32> to vector<8x8xf32>
    %350 = arith.mulf %347, %349 : vector<8x8xf32>
    %351 = arith.addf %330, %350 : vector<8x8xf32>
    %352 = arith.addf %351, %338 : vector<8x8xf32>
    %c1_140 = arith.constant 1 : index
    %c0_141 = arith.constant 0 : index
    %c0_142 = arith.constant 0 : index
    %353 = vector.load %arg6[%c1_140, %c0_141, %c0_142] : memref<2x1x32xf32, #tpu.memory_space<vmem>>, vector<1x1x32xf32>
    %354 = vector.shape_cast %353 : vector<1x1x32xf32> to vector<1x32xf32>
    %cst_143 = arith.constant dense<0.000000e+00> : vector<1x32xf32>
    %355 = tpu.matmul %354, %6, %cst_143 {dimension_numbers = #tpu.dot_dimension_numbers<[1], [1], [0], [0], [0, 0, 1, 0], [], []>} : vector<1x32xf32>, vector<32x32xf32>, vector<1x32xf32> -> vector<1x32xf32>
    %356 = arith.addf %355, %7 : vector<1x32xf32>
    %357 = math.tanh %356 : vector<1x32xf32>
    %cst_144 = arith.constant dense<0.000000e+00> : vector<8x1xf32>
    %358 = tpu.matmul %284, %357, %cst_144 {dimension_numbers = #tpu.dot_dimension_numbers<[1], [1], [0], [0], [0, 0, 1, 0], [], []>} : vector<8x32xf32>, vector<1x32xf32>, vector<8x1xf32> -> vector<8x1xf32>
    %cst_145 = arith.constant dense<0.000000e+00> : vector<8x1xf32>
    %359 = tpu.matmul %352, %358, %cst_145 {dimension_numbers = #tpu.dot_dimension_numbers<[1], [0], [0], [1], [0, 0, 1, 1], [], []>} : vector<8x8xf32>, vector<8x1xf32>, vector<8x1xf32> -> vector<8x1xf32>
    %360 = vector.broadcast %359 : vector<8x1xf32> to vector<8x32xf32>
    %361 = vector.broadcast %8 : vector<1x32xf32> to vector<8x32xf32>
    %362 = arith.mulf %360, %361 : vector<8x32xf32>
    %cst_146 = arith.constant 0.000000e+00 : f32
    %363 = vector.broadcast %cst_146 : f32 to vector<8x32xf32>
    %364 = arith.maximumf %362, %363 : vector<8x32xf32>
    %cst_147 = arith.constant dense<0.000000e+00> : vector<8x1xf32>
    %365 = tpu.matmul %9, %358, %cst_147 {dimension_numbers = #tpu.dot_dimension_numbers<[1], [0], [0], [1], [0, 0, 1, 1], [], []>} : vector<8x8xf32>, vector<8x1xf32>, vector<8x1xf32> -> vector<8x1xf32>
    %366 = vector.broadcast %365 : vector<8x1xf32> to vector<8x32xf32>
    %367 = vector.broadcast %8 : vector<1x32xf32> to vector<8x32xf32>
    %368 = arith.mulf %366, %367 : vector<8x32xf32>
    %cst_148 = arith.constant 0.000000e+00 : f32
    %369 = vector.broadcast %cst_148 : f32 to vector<8x32xf32>
    %370 = arith.maximumf %368, %369 : vector<8x32xf32>
    %371 = arith.addf %364, %370 : vector<8x32xf32>
    %cst_149 = arith.constant 5.000000e-01 : f32
    %372 = vector.broadcast %cst_149 : f32 to vector<8x32xf32>
    %373 = arith.mulf %371, %372 : vector<8x32xf32>
    %c1_150 = arith.constant 1 : index
    %c0_151 = arith.constant 0 : index
    %c0_152 = arith.constant 0 : index
    %374 = vector.load %arg18[%c1_150, %c0_151, %c0_152] : memref<2x8x32xf32, #tpu.memory_space<vmem>>, vector<1x8x32xf32>
    %375 = vector.shape_cast %374 : vector<1x8x32xf32> to vector<8x32xf32>
    %376 = vector.shape_cast %373 : vector<8x32xf32> to vector<1x8x32xf32>
    tpu.vector_store %arg18[%c1_150, %c0_151, %c0_152], %376 {strides = array<i32>} : memref<2x8x32xf32, #tpu.memory_space<vmem>>, vector<1x8x32xf32>,
    %c1_153 = arith.constant 1 : index
    %c0_154 = arith.constant 0 : index
    %c0_155 = arith.constant 0 : index
    %377 = vector.load %arg19[%c1_153, %c0_154, %c0_155] : memref<2x8x8xf32, #tpu.memory_space<vmem>>, vector<1x8x8xf32>
    %378 = vector.shape_cast %377 : vector<1x8x8xf32> to vector<8x8xf32>
    %379 = vector.shape_cast %352 : vector<8x8xf32> to vector<1x8x8xf32>
    tpu.vector_store %arg19[%c1_153, %c0_154, %c0_155], %379 {strides = array<i32>} : memref<2x8x8xf32, #tpu.memory_space<vmem>>, vector<1x8x8xf32>,
    return
  }
  func.func @transform_0(%arg0: i32, %arg1: memref<32xi32, #tpu.memory_space<smem>>) -> (i32, i32, i32) {
    %c0_i32 = arith.constant 0 : i32
    %c0_i32_0 = arith.constant 0 : i32
    %c0_i32_1 = arith.constant 0 : i32
    return %arg0, %c0_i32, %c0_i32_0 : i32, i32, i32
  }
  func.func @transform_1(%arg0: i32, %arg1: memref<32xi32, #tpu.memory_space<smem>>) -> (i32, i32, i32) {
    %c0_i32 = arith.constant 0 : i32
    %c0_i32_0 = arith.constant 0 : i32
    %c0_i32_1 = arith.constant 0 : i32
    return %arg0, %c0_i32, %c0_i32_0 : i32, i32, i32
  }
  func.func @transform_2(%arg0: i32, %arg1: memref<32xi32, #tpu.memory_space<smem>>) -> (i32, i32, i32) {
    %c0_i32 = arith.constant 0 : i32
    %c0_i32_0 = arith.constant 0 : i32
    %c0_i32_1 = arith.constant 0 : i32
    return %arg0, %c0_i32, %c0_i32_0 : i32, i32, i32
  }
  func.func @transform_3(%arg0: i32, %arg1: memref<32xi32, #tpu.memory_space<smem>>) -> (i32, i32, i32) {
    %c0_i32 = arith.constant 0 : i32
    %c0_i32_0 = arith.constant 0 : i32
    %c0_i32_1 = arith.constant 0 : i32
    return %arg0, %c0_i32, %c0_i32_0 : i32, i32, i32
  }
  func.func @transform_4(%arg0: i32, %arg1: memref<32xi32, #tpu.memory_space<smem>>) -> (i32, i32, i32) {
    %c0_i32 = arith.constant 0 : i32
    %c0_i32_0 = arith.constant 0 : i32
    %c0_i32_1 = arith.constant 0 : i32
    return %arg0, %c0_i32, %c0_i32_0 : i32, i32, i32
  }
  func.func @transform_5(%arg0: i32, %arg1: memref<32xi32, #tpu.memory_space<smem>>) -> (i32, i32, i32) {
    %c0_i32 = arith.constant 0 : i32
    %c0_i32_0 = arith.constant 0 : i32
    %c0_i32_1 = arith.constant 0 : i32
    return %arg0, %c0_i32, %c0_i32_0 : i32, i32, i32
  }
  func.func @transform_6(%arg0: i32, %arg1: memref<32xi32, #tpu.memory_space<smem>>) -> (i32, i32) {
    %c0_i32 = arith.constant 0 : i32
    %c0_i32_0 = arith.constant 0 : i32
    %c0_i32_1 = arith.constant 0 : i32
    return %c0_i32, %c0_i32_0 : i32, i32
  }
  func.func @transform_7(%arg0: i32, %arg1: memref<32xi32, #tpu.memory_space<smem>>) -> (i32, i32) {
    %c0_i32 = arith.constant 0 : i32
    %c0_i32_0 = arith.constant 0 : i32
    %c0_i32_1 = arith.constant 0 : i32
    return %c0_i32, %c0_i32_0 : i32, i32
  }
  func.func @transform_8(%arg0: i32, %arg1: memref<32xi32, #tpu.memory_space<smem>>) -> (i32, i32) {
    %c0_i32 = arith.constant 0 : i32
    %c0_i32_0 = arith.constant 0 : i32
    %c0_i32_1 = arith.constant 0 : i32
    return %c0_i32, %c0_i32_0 : i32, i32
  }
  func.func @transform_9(%arg0: i32, %arg1: memref<32xi32, #tpu.memory_space<smem>>) -> (i32, i32) {
    %c0_i32 = arith.constant 0 : i32
    %c0_i32_0 = arith.constant 0 : i32
    %c0_i32_1 = arith.constant 0 : i32
    return %c0_i32, %c0_i32_0 : i32, i32
  }
  func.func @transform_10(%arg0: i32, %arg1: memref<32xi32, #tpu.memory_space<smem>>) -> (i32, i32) {
    %c0_i32 = arith.constant 0 : i32
    %c0_i32_0 = arith.constant 0 : i32
    %c0_i32_1 = arith.constant 0 : i32
    return %c0_i32, %c0_i32_0 : i32, i32
  }
  func.func @transform_11(%arg0: i32, %arg1: memref<32xi32, #tpu.memory_space<smem>>) -> (i32, i32) {
    %c0_i32 = arith.constant 0 : i32
    %c0_i32_0 = arith.constant 0 : i32
    %c0_i32_1 = arith.constant 0 : i32
    return %c0_i32, %c0_i32_0 : i32, i32
  }
  func.func @transform_12(%arg0: i32, %arg1: memref<32xi32, #tpu.memory_space<smem>>) -> (i32, i32) {
    %c0_i32 = arith.constant 0 : i32
    %c0_i32_0 = arith.constant 0 : i32
    %c0_i32_1 = arith.constant 0 : i32
    return %c0_i32, %c0_i32_0 : i32, i32
  }
  func.func @transform_13(%arg0: i32, %arg1: memref<32xi32, #tpu.memory_space<smem>>) -> (i32, i32) {
    %c0_i32 = arith.constant 0 : i32
    %c0_i32_0 = arith.constant 0 : i32
    %c0_i32_1 = arith.constant 0 : i32
    return %c0_i32, %c0_i32_0 : i32, i32
  }
  func.func @transform_14(%arg0: i32, %arg1: memref<32xi32, #tpu.memory_space<smem>>) -> (i32, i32) {
    %c0_i32 = arith.constant 0 : i32
    %c0_i32_0 = arith.constant 0 : i32
    %c0_i32_1 = arith.constant 0 : i32
    return %c0_i32, %c0_i32_0 : i32, i32
  }
  func.func @transform_15(%arg0: i32, %arg1: memref<32xi32, #tpu.memory_space<smem>>) -> (i32, i32) {
    %c0_i32 = arith.constant 0 : i32
    %c0_i32_0 = arith.constant 0 : i32
    %c0_i32_1 = arith.constant 0 : i32
    return %c0_i32, %c0_i32_0 : i32, i32
  }
  func.func @transform_16(%arg0: i32, %arg1: memref<32xi32, #tpu.memory_space<smem>>) -> (i32, i32, i32) {
    %c0_i32 = arith.constant 0 : i32
    %c0_i32_0 = arith.constant 0 : i32
    %c0_i32_1 = arith.constant 0 : i32
    return %arg0, %c0_i32, %c0_i32_0 : i32, i32, i32
  }
  func.func @transform_17(%arg0: i32, %arg1: memref<32xi32, #tpu.memory_space<smem>>) -> (i32, i32, i32) {
    %c0_i32 = arith.constant 0 : i32
    %c0_i32_0 = arith.constant 0 : i32
    %c0_i32_1 = arith.constant 0 : i32
    return %arg0, %c0_i32, %c0_i32_0 : i32, i32, i32
  }
}

</mosaic_0001>

<bundles_post_ra>
// kernel: neg.1
= control target key start
LH: loop header
LB: loop body
LE: loop exit
PB: predicated region body
PF: predicated region fallthrough
CT: control target
= control target key end

     0   :  { %2 = vsyncpa [#allocation1], 0  ;;  %s59_s0 = inlined_call_operand.vmem [shape: f32[4], index: 0, kind: input, shape index: {}]   ;;  %s60_s1 = inlined_call_operand.hbm [shape: f32[4], index: 1, kind: output, shape index: {}]  }
   0x1   :  { %v3_v0 = vld [vmem:[%s59_s0] sm:$0x1]  ;;  %s42_s0 = smov [#allocation0]  }
   0x2   :  { %v6_v1 = vxor.u32 2147483648, %v3_v0  ;;  %s13_s8 = sshll.u32 %s42_s0, 4  ;;  %s14_s8 = int_to_ptr.vmem [resolvable:$true] %s13_s8 }
   0x3   :  { %s20_s9 = scalar_lea.vmem %s14_s8, 16  ;;  %s24_s10 = scalar_lea.vmem %s14_s8, 32 }
   0x4   :  { %8 = vst [vmem:[#allocation0] sm:$0x1] %v6_v1  ;;  %p21_p0 = scmp.ne.s32.totalorder %s14_s8, %s20_s9  ;;  %p25_p1 = scmp.lt.s32.totalorder %s14_s8, %s14_s8 }
   0x5   :  { %p26_p2 = scmp.lt.s32.totalorder %s24_s10, %s20_s9 }
   0x7   :  { %p27_p3 = por %p26_p2, %p25_p1 }
   0x9   :  { %p28_p4 = pnand %p27_p3, %p21_p0 }
   0xb   :  { %31 = shalt.err (!%p28_p4)
}
   0xc   :  { %16 = dma.vmem_to_hbm [thread:$0]  %s14_s8, 16, %s60_s1, [#allocation1]  }
   0xd   :  { %40 = dma.done.wait [#allocation1], 16  }
   0xe   :  { %41 = vsyncadd [#allocation1], 4294967280 }
   0xf   :  { %18 = vsyncpa [#allocation1], 1 }

// kernel: sem_forward.2
= control target key start
LH: loop header
LB: loop body
LE: loop exit
PB: predicated region body
PF: predicated region fallthrough
CT: control target
= control target key end

     0   :  { %s1525_s0 = inlined_call_operand.vmem [shape: f32[4,1,32], index: 0, kind: input, shape index: {}]   ;;  %s1526_s1 = inlined_call_operand.vmem [shape: f32[32,32], index: 1, kind: input, shape index: {}]   ;;  %s1527_s2 = inlined_call_operand.hbm [shape: f32[1,32], index: 2, kind: input, shape index: {}]   ;;  %s1528_s3 = inlined_call_operand.hbm [shape: bf16[4,16,32], index: 3, kind: input, shape index: {}]   ;;  %s1529_s4 = inlined_call_operand.hbm [shape: f32[4,1,16], index: 4, kind: input, shape index: {}]   ;;  %s1530_s5 = inlined_call_operand.vmem [shape: f32[4,1,16], index: 5, kind: output, shape index: {0}]   ;;  %s1531_s6 = inlined_call_operand.hbm [shape: f32[4,1,32], index: 6, kind: output, shape index: {1}]  }
   0x1   :  { %1536 = sst [smem:[#allocation12_spill]] %s1528_s3 }
   0x2   :  { %12 = vsyncpa [#allocation3], 0 }
   0x3   :  { %13 = vsyncpa [#allocation6], 0 }
   0x4   :  { %15 = vsyncpa [#allocation6 + $0x1], 0 }
   0x5   :  { %16 = vsyncpa [#allocation4], 0 }
   0x6   :  { %18 = vsyncpa [#allocation4 + $0x1], 0  ;;  %s1221_s21 = smov 0   ;;  %s1223_s22 = smov 0  }
   0x7   :  { %s1225_s23 = smov 0   ;;  %s1227_s24 = smov 0  }
   0x8 LB: > { %s1242_s25 = sadd.s32 1, %s1172_s24   ;;  %s99_s26 = sadd.s32 1, %s1168_s23  ;;  %s1172_s24 = sphi %s1227_s24, %s1554_s24   ;;  %s1168_s23 = sphi %s1225_s23, %s1553_s23   ;;  %s1164_s22 = sphi %s1223_s22, %s1552_s22   ;;  %s1160_s21 = sphi %s1221_s21, %s1551_s21  }
   0x9   : > { %s96_s27 = ssub.s32 %s1172_s24, %s1242_s25  ;;  %p106_p0 = scmp.ne.s32.totalorder %s1168_s23, %s1164_s22 }
   0xa   : > { %p97_p1 = scmp.eq.s32.totalorder %s96_s27, 0  ;;  %p107_p2 = scmp.eq.s32.totalorder %s1172_s24, 0 }
   0xb   : > { %p968_p4 = scmp.lt.s32.totalorder %s1172_s24, 2  ;;  %s236_s29 = sand.u32 1, %s1172_s24  }
   0xc   : > { %s1253_s28 = scalar_select %p97_p1, %s1168_s23, %s99_s26  }
   0xd   : > { %p108_p5 = por %p107_p2, %p106_p0  ;;  %s238_s30 = sand.u32 1, %s1168_s23  }
   0xe   : > { %s843_s7 = sshll.u32 %s238_s30, 4  ;;  %s883_s8 = sshll.u32 %s1172_s24, 8 }
   0xf   : > { %s1537_s3 = sld [smem:[#allocation12_spill]]  ;;  %s240_s12 = scalar_lea.vmem [#allocation5], %s843_s7 }
  0x10   : > { %s248_s13 = sshll.u32 %s240_s12, 4  ;;  %p1268_p6 = pnand %p968_p4, %p108_p5  ;;  %s1272_s13 = int_to_ptr.vmem [resolvable:$true] %s248_s13 }
  0x11   : > { %s1274_s15 = scalar_lea.sflag [#allocation6], %s236_s29 }
  0x12   : > { %p1024_p8 = pneg %p1268_p6 }
  0x15   : > { %s1266_s11 = scalar_lea.hbm %s1537_s3, %s883_s8  ;;  %s1027_s19 = scalar_lea.hbm %s1537_s3, 512 }
  0x16   : > { %s1022_s16 = scalar_lea.hbm %s1266_s11, 256  ;;  %p1028_p11 = scmp.lt.s32.totalorder %s1266_s11, %s1537_s3 }
  0x17   : > { %p1023_p7 = scmp.ne.s32.totalorder %s1266_s11, %s1022_s16  ;;  %p1029_p12 = scmp.lt.s32.totalorder %s1027_s19, %s1022_s16 }
  0x19   : > { %p1025_p9 = pnand %p1024_p8, %p1023_p7  ;;  %p1030_p13 = por %p1029_p12, %p1028_p11 }
  0x1b   : > { %p1026_p10 = pneg %p1025_p9 }
  0x1d   : > { %p1031_p1 = pnand %p1030_p13, %p1026_p10 }
  0x1f   : > { %1034 = shalt.err (!%p1031_p1)
}
  0x20   : > { %s1035_s27 = scalar_lea.vmem %s1272_s13, 256  ;;  %s1174_s29 = smov [#allocation5]  }
  0x21   : > { %p1036_p2 = scmp.ne.s32.totalorder %s1272_s13, %s1035_s27  ;;  %s1040_s7 = sshll.u32 %s1174_s29, 4  ;;  %s1041_s7 = int_to_ptr.vmem [resolvable:$false] %s1040_s7 }
  0x22   : > { %s1042_s8 = scalar_lea.vmem %s1041_s7, 512  ;;  %p1043_p7 = scmp.lt.s32.totalorder %s1272_s13, %s1041_s7 }
  0x23   : > { %p1038_p4 = pnand %p1036_p2, %p1024_p8  ;;  %p1044_p9 = scmp.lt.s32.totalorder %s1042_s8, %s1035_s27 }
  0x25   : > { %p1039_p5 = pneg %p1038_p4  ;;  %p1045_p3 = por %p1044_p9, %p1043_p7 }
  0x27   : > { %p1046_p11 = pnand %p1045_p3, %p1039_p5 }
  0x29   : > { %1049 = shalt.err (!%p1046_p11)
}
  0x2a   : > { %s1175_s9 = smov 64   ;;  %s1176_s10 = smov 4  }
  0x2b   : > { %959 = dma.hbm_to_vmem [thread:$0]  (!%p1268_p6), %s1266_s11, 256, %s1272_s13, %s1274_s15, %s1175_s9, %s1175_s9, %s1176_s10  }
  0x2c   : > { %s847_s12 = sshll.u32 %s238_s30, 1  ;;  %s1304_s18 = sadd.s32 4294967295, %s1172_s24  }
  0x2d   : > { %s262_s16 = scalar_lea.vmem [#allocation7], %s847_s12  ;;  %s839_s19 = sadd.s32 4294967294, %s1172_s24  }
  0x2e   : > { %s269_s17 = sshll.u32 %s262_s16, 4  ;;  %p112_p3 = scmp.ne.s32.totalorder %s1164_s22, %s1160_s21  ;;  %s1344_s17 = int_to_ptr.vmem [resolvable:$true] %s269_s17 }
  0x2f   : > { %p1532_p10 = scmp.eq.s32.totalorder %s1304_s18, 0  ;;  %p188_p12 = scmp.eq.s32.totalorder %s1304_s18, 1 }
  0x30   : > { %p194_p13 = scmp.eq.s32.totalorder %s839_s19, 1  ;;  %p840_p1 = scmp.ge.s32.totalorder %s1172_s24, 1 }
  0x31   : > { %p1314_p2 = por %p1532_p10, %p112_p3  ;;  %p1321_p4 = por %p188_p12, %p106_p0 }
  0x32   : > { %p1325_p5 = por %p194_p13, %p112_p3  ;;  %p201_p7 = scmp.lt.s32.totalorder %s1172_s24, 3 }
  0x33   : > { %s1539_s11 = scalar_select %p1314_p2, 1, 0 }
  0x34   : > { %s1540_s30 = scalar_select %p1321_p4, 1, 0 }
  0x35   : > { %s1541_s13 = scalar_select %p1325_p5, 1, 0 }
  0x36   : > { %p1330_p9 = pnand %p840_p1, %p201_p7  ;;  %s1177_s26 = smov [#allocation2]  }
  0x37   : > { %s217_s27 = sshll.u32 %s1177_s26, 4  ;;  %s884_s29 = sshll.u32 %s1172_s24, 5  ;;  %s1334_s27 = int_to_ptr.vmem [resolvable:$true] %s217_s27 }
  0x38   : > { %s1542_s20 = scalar_select %p1330_p9, 1, 0 }
  0x39   : > { %p952_p0 = pneg %p1330_p9  ;;  %s1342_s9 = scalar_lea.hbm %s1529_s4, %s884_s29 }
  0x3a   : > { %s1050_s12 = scalar_lea.hbm %s1342_s9, 32  ;;  %s1055_s26 = scalar_lea.hbm %s1529_s4, 64 }
  0x3b   : > { %p1348_p11 = pnand %p952_p0, %p1532_p10  ;;  %p1051_p3 = scmp.ne.s32.totalorder %s1342_s9, %s1050_s12 }
  0x3c   : > { %p1056_p1 = scmp.lt.s32.totalorder %s1342_s9, %s1529_s4  ;;  %p1057_p7 = scmp.lt.s32.totalorder %s1055_s26, %s1050_s12 }
  0x3d   : > { %p1053_p12 = pnand %p1051_p3, %p1024_p8 }
  0x3e   : > { %p1058_p5 = por %p1057_p7, %p1056_p1 }
  0x3f   : > { %p1054_p13 = pneg %p1053_p12 }
  0x41   : > { %p1059_p0 = pnand %p1058_p5, %p1054_p13 }
  0x43   : > { %1062 = shalt.err (!%p1059_p0)
}
  0x44   : > { %s1063_s8 = scalar_lea.vmem %s1344_s17, 32  ;;  %s1178_s16 = smov [#allocation7]  }
  0x45   : > { %p1064_p10 = scmp.ne.s32.totalorder %s1344_s17, %s1063_s8  ;;  %s1068_s19 = sshll.u32 %s1178_s16, 4  ;;  %s1069_s19 = int_to_ptr.vmem [resolvable:$false] %s1068_s19 }
  0x46   : > { %s1070_s3 = scalar_lea.vmem %s1069_s19, 64  ;;  %p1071_p4 = scmp.lt.s32.totalorder %s1344_s17, %s1069_s19 }
  0x47   : > { %p1066_p3 = pnand %p1064_p10, %p1024_p8  ;;  %p1072_p2 = scmp.lt.s32.totalorder %s1070_s3, %s1063_s8 }
  0x49   : > { %p1067_p12 = pneg %p1066_p3  ;;  %p1073_p9 = por %p1072_p2, %p1071_p4 }
  0x4b   : > { %p1074_p1 = pnand %p1073_p9, %p1067_p12 }
  0x4d   : > { %1077 = shalt.err (!%p1074_p1)
}
  0x4e   : > { %s1179_s12 = smov 16   ;;  %s1180_s26 = smov 1  }
  0x4f   : > { %962 = dma.hbm_to_vmem [thread:$0]  (!%p1268_p6), %s1342_s9, 32, %s1344_s17, %s1274_s15, %s1179_s12, %s1179_s12, %s1180_s26  }
  0x50   : > { %p1080_p8 = pneg %p1348_p11  ;;  %s1089_s29 = scalar_lea.vmem %s1334_s27, 16 }
  0x51   : > { %p1090_p10 = scmp.ne.s32.totalorder %s1334_s27, %s1089_s29  ;;  %s1096_s3 = scalar_lea.vmem %s1334_s27, 32 }
  0x52   : > { %p1097_p5 = scmp.lt.s32.totalorder %s1334_s27, %s1334_s27  ;;  %p1098_p9 = scmp.lt.s32.totalorder %s1096_s3, %s1089_s29 }
  0x53   : > { %p1092_p2 = pnand %p1090_p10, %p1080_p8 }
  0x54   : > { %p1099_p13 = por %p1098_p9, %p1097_p5 }
  0x55   : > { %p1093_p4 = pneg %p1092_p2 }
  0x57   : > { %p1100_p7 = pnand %p1099_p13, %p1093_p4 }
  0x59   : > { %1103 = shalt.err (!%p1100_p7)
}
  0x5a   : > { %955 = dma.hbm_to_vmem [thread:$0]  (!%p1348_p11), %s1527_s2, 16, %s1334_s27, [#allocation3]  }
  0x5b   : > { %p1544_p6 = scmp.ne.s32.totalorder %s1542_s20, 0 }
  0x5c   : > { %p1545_p0 = scmp.eq.s32.totalorder (!%p1544_p6), %s1304_s18, 0 }
  0x5d   : > { %281 = sbr.rel (%p1544_p6) target bundleno = 843 (0x34b), region = 40 }
  0x62   : > { %1147 = dma.done.wait (%p1545_p0), [#allocation3], 16   ;;  %p1546_p3 = pmov %p1545_p0 }
  0x63   : > { %s287_s14 = sand.u32 1, %s1304_s18   ;;  %s1396_s15 = sand.u32 1, %s1164_s22  }
  0x64   : > { %1149 = vsyncadd (%p1546_p3), [#allocation3], 4294967280  ;;  %s852_s17 = sshll.u32 %s1396_s15, 4  ;;  %s288_s9 = scalar_lea.sflag [#allocation6], %s287_s14 }
  0x65   : > { %s1399_s10 = scalar_lea.vmem [#allocation5], %s852_s17  ;;  %p1547_p11 = scmp.ne.s32.totalorder %s1539_s11, 0 }
  0x67   : > { %1151 = dma.done.wait (%p1547_p11), %s288_s9, 288  }
  0x68   : > { %1153 = vsyncadd (%p1547_p11), %s288_s9, 4294967008  ;;  %v1181_v0 = vmov 0.0   ;;  %vm1182_vm0 = vmmov 0   ;;  %vm362_vm1 = vcmask 261120   ;;  %s855_s20 = sshll.u32 %s1304_s18, 1  ;;  %v359_v1 = vld [vmem:[%s1526_s1 + $0x18] sm:$0xff] }
  0x69   : > { %900 = vmatprep.subr.mxu0 %v1181_v0  ;;  %908 = vmatprep.mubr.msk.f32.mxu0 %vm1182_vm0, %v1181_v0  ;;  %v358_v2 = vld [vmem:[%s1526_s1 + $0x10] sm:$0xff]  ;;  %p343_p12 = scmp.lt.s32.totalorder %s855_s20, 3  ;;  %v357_v3 = vld [vmem:[%s1526_s1 + $0x8] sm:$0xff]  ;;  %v356_v4 = vld [vmem:[%s1526_s1] sm:$0xff]  ;;  %s853_s17 = sshll.u32 %s1396_s15, 1  ;;  %vm504_vm2 = vcmask 253952  }
  0x6a   : > { %911 = vmatprep.subr.bf16.mxu1 %v1181_v0  ;;  %913 = vmatprep.mubr.msk.bf16.mxu1 %vm1182_vm0, %v1181_v0  ;;  %v1012_v6 = vld [vmem:[%s1399_s10] sm:$0xff]   ;;  %v360_v8 = vld [vmem:[#allocation2] sm:$0x1]  ;;  %s1440_s9 = scalar_lea.vmem [#allocation8], %s853_s17  ;;  %vm524_vm4 = vcmask 122880   ;;  %s885_s3 = sshll.u32 %s1304_s18, 5 }
  0x6b   : > { %901 = vmatpush3.xpose.msk.msra.mxu0 %vm362_vm1, %v359_v1  ;;  %s1556_s20 = smov (!%p343_p12, %s855_s20), 3  ;;  %v461_v7 = vsel %vm362_vm1, %v1012_v6, 0  ;;  %v1013_v17 = vld [vmem:[%s1399_s10 + $0x8] sm:$0xff]   ;;  %s1461_s10 = scalar_lea.vmem [#allocation7], %s853_s17 }
  0x6c   : > { %902 = vmatprep.subr.mxu0 %v1181_v0  ;;  %s1429_s14 = scalar_lea.vmem %s1525_s0, %s1556_s20  ;;  %912 = vmatpush3.bf16.xpose.msra.mxu1 %v461_v7  ;;  %v616_v18 = vsel %vm362_vm1, %v1013_v17, 0  ;;  %v521_v39 = vld [vmem:[%s1461_s10] sm:$0x1]  ;;  %s1468_s26 = scalar_lea.vmem %s1530_s5, %s1556_s20 }
  0x6d   : > { %v361_v5 = vld [vmem:[%s1429_s14] sm:$0x1]  ;;  %917 = vmatprep.subr.mxu1 %v1181_v0  ;;  %v864_v16 = vld [vmem:[%s1429_s14 + $0x1] sm:$0x1]  ;;  %vm522_vm3 = vcmp.gt.f32.partialorder %v521_v39, 0.5  ;;  %s705_s29 = sshll.u32 %s1440_s9, 4  ;;  %s1479_s8 = scalar_lea.hbm %s1531_s6, %s885_s3  ;;  %s1473_s29 = int_to_ptr.vmem [resolvable:$true] %s705_s29 }
  0x6e   : > { %s688_s14 = scalar_lea.sflag [#allocation4], %s1396_s15  ;;  %s1104_s17 = scalar_lea.vmem %s1473_s29, 32 }
  0x6f   : > { %903 = vmatpush3.xpose.msk.msra.mxu0 %vm362_vm1, %v358_v2  ;;  %p1105_p1 = scmp.ne.s32.totalorder %s1473_s29, %s1104_s17  ;;  %p1548_p8 = scmp.ne.s32.totalorder %s1540_s30, 0 }
  0x70   : > { %904 = vmatprep.subr.mxu0 %v1181_v0 }
  0x71   : > { %p1106_p10 = pnand %p1105_p1, %p1548_p8 }
  0x73   : > { %905 = vmatpush3.xpose.msk.msra.mxu0 %vm362_vm1, %v357_v3  ;;  %p1107_p2 = pneg %p1106_p10 }
  0x74   : > { %906 = vmatprep.subr.mxu0 %v1181_v0 }
  0x77   : > { %907 = vmatpush3.xpose.msk.msra.mxu0 %vm362_vm1, %v356_v4 }
  0x78   : > { %928 = vmatprep.subr.bf16.mxu0 %v1181_v0 }
  0x7a   : > { %909 = vmatmul.mubr.msk.f32.vlgmr.msra.gmra.mxu0 %vm362_vm1, %v361_v5 }
  0x7b   : > { %930 = vmatprep.mubr.msk.bf16.mxu0 %vm1182_vm0, %v1181_v0  ;;  %929 = vmatpush3.bf16.xpose.msra.mxu0 %v616_v18 }
 0x13a   : > { %v444_v9 = vpop.f32.mrf.mxu0 }
 0x13b   : > { %v445_v10 = vadd.f32 %v444_v9, %v360_v8 }
 0x13c   : > { %v910_v11 = vpop.f32.mrf.mxu0 }
 0x13d   : > { %1014 = vtanh.f32 %v445_v10 }
 0x14a   : > { %v1015_v12 = vpop.eup %1014 }
 0x14b   : > { %v449_v13 = vpack.c.bf16 %v1015_v12, %v1015_v12  ;;  %v503_v14 = vmul.f32 %v1015_v12, %v1015_v12  ;;  %526 = vst.msk [vmem:[%s1440_s9] sm:$0x1] %vm504_vm2, %v1015_v12 }
 0x14d   : > { %914 = vmatmul.mubr.msk.bf16.vlgmr.msra.gmra.mxu1 %vm362_vm1, %v449_v13  ;;  %v505_v15 = vsel %vm504_vm2, %v503_v14, 0.0 }
 0x14e   : > { %918 = vmatpush3.xpose.msk.msra.mxu1 %vm362_vm1, %v359_v1  ;;  %506 = vadd.xlane.f32.xlu0 %v505_v15 }
 0x14f   : > { %919 = vmatprep.subr.mxu1 %v1181_v0  ;;  %925 = vmatprep.mubr.msk.f32.mxu1 %vm1182_vm0, %v1181_v0 }
 0x152   : > { %920 = vmatpush3.xpose.msk.msra.mxu1 %vm362_vm1, %v358_v2 }
 0x153   : > { %921 = vmatprep.subr.mxu1 %v1181_v0 }
 0x156   : > { %922 = vmatpush3.xpose.msk.msra.mxu1 %vm362_vm1, %v357_v3 }
 0x157   : > { %923 = vmatprep.subr.mxu1 %v1181_v0 }
 0x15a   : > { %924 = vmatpush3.xpose.msk.msra.mxu1 %vm362_vm1, %v356_v4 }
 0x15d   : > { %926 = vmatmul.mubr.msk.f32.vlgmr.msra.gmra.mxu1 %vm362_vm1, %v864_v16 }
 0x1d7   : > { %v507_v19 = vpop.xlane.xlu0 %506 }
 0x1d8   : > { %v508_v20 = vrot.slane %v507_v19, 4 }
 0x1da   : > { %v509_v21 = vadd.f32 %v508_v20, %v507_v19 }
 0x1dc   : > { %v510_v22 = vrot.slane %v509_v21, 2 }
 0x1de   : > { %v511_v23 = vadd.f32 %v510_v22, %v509_v21 }
 0x1e0   : > { %v512_v24 = vrot.slane %v511_v23, 1 }
 0x1e2   : > { %v513_v25 = vadd.f32 %v512_v24, %v511_v23 }
 0x1e4   : > { %934 = vpush %v513_v25 }
 0x20d   : > { %v497_v26 = vpop.f32.mrf.mxu1 }
 0x20f   : > { %v915_v27 = vpop.f32.mrf.mxu1 }
 0x211   : > { %v500_v28 = vpop.f32.mrf.mxu1 }
 0x213   : > { %v916_v29 = vpop.f32.mrf.mxu1 }
 0x215   : > { %s935_s27 = spop %934 }
 0x216   : > { %s515_s16 = sadd.f32 1e-12, %s935_s27 }
 0x218   : > { %v516_v30 = vstv %s515_s16 }
 0x219   : > { %1016 = vrsqrt.f32 %v516_v30 }
 0x21d   : > { %v598_v31 = vpop.f32.mrf.mxu1 }
 0x21e   : > { %v599_v32 = vadd.f32 %v598_v31, %v360_v8 }
 0x21f   : > { %v927_v33 = vpop.f32.mrf.mxu1 }
 0x220   : > { %1018 = vtanh.f32 %v599_v32 }
 0x226   : > { %v1017_v34 = vpop.eup %1016 }
 0x227   : > { %936 = vpush %v1017_v34 }
 0x22d   : > { %v1019_v35 = vpop.eup %1018 }
 0x22e   : > { %v603_v36 = vpack.c.bf16 %v1019_v35, %v1019_v35  ;;  %v658_v37 = vmul.f32 %v1019_v35, %v1019_v35  ;;  %876 = vst.msk [vmem:[%s1440_s9 + $0x1] sm:$0x1] %vm504_vm2, %v1019_v35  ;;  %s1183_s9 = smov [#allocation8]  }
 0x22f   : > { %s1108_s27 = sshll.u32 %s1183_s9, 4  ;;  %s1109_s27 = int_to_ptr.vmem [resolvable:$false] %s1108_s27 }
 0x230   : > { %931 = vmatmul.mubr.msk.bf16.vlgmr.msra.gmra.mxu0 %vm362_vm1, %v603_v36  ;;  %v659_v38 = vsel %vm504_vm2, %v658_v37, 0.0  ;;  %s1110_s16 = scalar_lea.vmem %s1109_s27, 64  ;;  %p1111_p4 = scmp.lt.s32.totalorder %s1473_s29, %s1109_s27 }
 0x231   : > { %660 = vadd.xlane.f32.xlu0 %v659_v38  ;;  %p1112_p5 = scmp.lt.s32.totalorder %s1110_s16, %s1104_s17 }
 0x233   : > { %p1113_p9 = por %p1112_p5, %p1111_p4 }
 0x235   : > { %p1114_p13 = pnand %p1113_p9, %p1107_p2 }
 0x258   : > { %s937_s11 = spop %936 }
 0x259   : > { %v519_v40 = vstv %s937_s11 }
 0x25a   : > { %v520_v41 = vmul.f32 %v519_v40, %v497_v26 }
 0x25c   : > { %v523_v42 = vsel %vm522_vm3, 1e-09, %v520_v41 }
 0x25d   : > { %525 = vst.msk [vmem:[%s1468_s26] sm:$0x1] %vm524_vm4, %v523_v42 }
 0x2ba   : > { %v661_v43 = vpop.xlane.xlu0 %660 }
 0x2bb   : > { %v662_v44 = vrot.slane %v661_v43, 4 }
 0x2bd   : > { %v663_v45 = vadd.f32 %v662_v44, %v661_v43 }
 0x2bf   : > { %v664_v46 = vrot.slane %v663_v45, 2 }
 0x2c1   : > { %v665_v47 = vadd.f32 %v664_v46, %v663_v45 }
 0x2c2   : > { %1117 = shalt.err (!%p1114_p13)
}
 0x2c3   : > { %s1118_s18 = scalar_lea.hbm %s1479_s8, 32  ;;  %s1122_s12 = scalar_lea.hbm %s1531_s6, 64 }
 0x2c4   : > { %p1119_p7 = scmp.ne.s32.totalorder %s1479_s8, %s1118_s18  ;;  %p1123_p3 = scmp.lt.s32.totalorder %s1479_s8, %s1531_s6 }
 0x2c5   : > { %p1124_p11 = scmp.lt.s32.totalorder %s1122_s12, %s1118_s18 }
 0x2c6   : > { %p1120_p6 = pnand %p1119_p7, %p1548_p8 }
 0x2c7   : > { %p1125_p12 = por %p1124_p11, %p1123_p3 }
 0x2c8   : > { %p1121_p0 = pneg %p1120_p6 }
 0x2ca   : > { %p1126_p1 = pnand %p1125_p12, %p1121_p0 }
 0x2cc   : > { %1129 = shalt.err (!%p1126_p1)
}
 0x2cd   : > { %s1184_s7 = smov 16   ;;  %s1185_s17 = smov 1   ;;  %v666_v48 = vrot.slane %v665_v47, 1  ;;  %v874_v56 = vld [vmem:[%s1461_s10 + $0x1] sm:$0x1] }
 0x2ce   : > { %950 = dma.vmem_to_hbm [thread:$0]  (%p1548_p8), %s1473_s29, 32, %s1479_s8, %s688_s14, %s1184_s7, %s1184_s7, %s1185_s17   ;;  %vm677_vm5 = vcmp.gt.f32.partialorder %v874_v56, 0.5 }
 0x2cf   : > { %v667_v49 = vadd.f32 %v666_v48, %v665_v47 }
 0x2d1   : > { %938 = vpush %v667_v49 }
 0x2f0   : > { %v652_v50 = vpop.f32.mrf.mxu0 }
 0x2f2   : > { %v932_v51 = vpop.f32.mrf.mxu0 }
 0x2f4   : > { %v655_v52 = vpop.f32.mrf.mxu0 }
 0x2f6   : > { %v933_v53 = vpop.f32.mrf.mxu0 }
 0x302   : > { %s939_s9 = spop %938 }
 0x303   : > { %s669_s27 = sadd.f32 1e-12, %s939_s9 }
 0x305   : > { %v670_v54 = vstv %s669_s27 }
 0x306   : > { %1020 = vrsqrt.f32 %v670_v54 }
 0x313   : > { %v1021_v55 = vpop.eup %1020 }
 0x314   : > { %940 = vpush %v1021_v55 }
 0x345   : > { %s941_s16 = spop %940 }
 0x346   : > { %v673_v57 = vstv %s941_s16 }
 0x347   : > { %v674_v58 = vmul.f32 %v673_v57, %v652_v50 }
 0x349   : > { %v678_v59 = vsel %vm677_vm5, 1e-09, %v674_v58 }
 0x34a   : > { %875 = vst.msk [vmem:[%s1468_s26 + $0x1] sm:$0x1] %vm524_vm4, %v678_v59 }
 0x34b PF: > { %s727_s30 = sand.u32 1, %s1160_s21   ;;  %p1549_p8 = scmp.ne.s32.totalorder %s1541_s13, 0 }
 0x34c   : > { %p1550_p10 = scmp.ge.s32.totalorder %s1172_s24, 2  ;;  %s728_s15 = scalar_lea.sflag [#allocation4], %s727_s30 }
 0x34e   : > { %p964_p2 = pnand %p1550_p10, %p1549_p8 }
 0x350   : > { %p965_p4 = pneg %p964_p2 }
 0x352   : > { %1155 = dma.done.wait (%p965_p4), %s728_s15, 32  }
 0x353   : > { %1157 = vsyncadd (%p965_p4), %s728_s15, 4294967264  ;;  %p21_p5 = scmp.ge.s32.totalorder %s1242_s25, 4   ;;  %s1551_s21 = smov %s1164_s22 }
 0x354   : > { %s1552_s22 = smov %s1168_s23  ;;  %s1553_s23 = smov %s1253_s28 }
 0x355   : > { %s1554_s24 = smov %s1242_s25  ;;  %23 = sbr.rel (!%p21_p5) target bundleno = 8 (0x8), region = 121 }
 0x35a   :  { %733 = vsyncpa [#allocation3], 1 }
 0x35b   :  { %735 = vsyncpa [#allocation3 + $0x1], 1 }
 0x35c   :  { %736 = vsyncpa [#allocation6], 1 }
 0x35d   :  { %738 = vsyncpa [#allocation6 + $0x1], 1 }
 0x35e   :  { %739 = vsyncpa [#allocation4], 1 }
 0x35f   :  { %741 = vsyncpa [#allocation4 + $0x1], 1 }

// kernel: sem_forward.3
= control target key start
LH: loop header
LB: loop body
LE: loop exit
PB: predicated region body
PF: predicated region fallthrough
CT: control target
= control target key end

     0   :  { %s4230_s0 = inlined_call_operand.vmem [shape: s32[32], index: 0, kind: input, shape index: {}]   ;;  %s4231_s1 = inlined_call_operand.vmem [shape: f32[4,8,1], index: 1, kind: input, shape index: {}]   ;;  %s4232_s2 = inlined_call_operand.vmem [shape: bf16[4,16,32], index: 2, kind: input, shape index: {}]   ;;  %s4233_s3 = inlined_call_operand.vmem [shape: bf16[4,16,16], index: 3, kind: input, shape index: {}]   ;;  %s4234_s4 = inlined_call_operand.vmem [shape: bf16[4,8,32], index: 4, kind: input, shape index: {}]   ;;  %s4235_s5 = inlined_call_operand.vmem [shape: f32[4,1,32], index: 5, kind: input, shape index: {}]   ;;  %s4236_s6 = inlined_call_operand.vmem [shape: f32[4,8,8], index: 6, kind: input, shape index: {}]   ;;  %s4237_s7 = inlined_call_operand.vmem [shape: f32[24,32], index: 7, kind: input, shape index: {}]   ;;  %s4238_s8 = inlined_call_operand.vmem [shape: f32[16,8], index: 8, kind: input, shape index: {}]   ;;  %s4239_s9 = inlined_call_operand.vmem [shape: f32[8,8], index: 9, kind: input, shape index: {}]   ;;  %s4240_s10 = inlined_call_operand.vmem [shape: f32[24,8], index: 10, kind: input, shape index: {}]   ;;  %s4241_s11 = inlined_call_operand.vmem [shape: f32[32,32], index: 11, kind: input, shape index: {}]   ;;  %s4242_s12 = inlined_call_operand.vmem [shape: f32[1,32], index: 12, kind: input, shape index: {}]   ;;  %s4243_s13 = inlined_call_operand.vmem [shape: f32[32,32], index: 13, kind: input, shape index: {}]   ;;  %s4244_s14 = inlined_call_operand.vmem [shape: f32[1,32], index: 14, kind: input, shape index: {}]   ;;  %s4245_s15 = inlined_call_operand.vmem [shape: f32[1,32], index: 15, kind: input, shape index: {}]   ;;  %s4246_s16 = inlined_call_operand.vmem [shape: f32[8,8], index: 16, kind: input, shape index: {}]   ;;  %s4247_s17 = inlined_call_operand.hbm [shape: f32[4,8,32], index: 17, kind: output, shape index: {0}]   ;;  %s4248_s18 = inlined_call_operand.hbm [shape: f32[4,8,8], index: 18, kind: output, shape index: {1}]  }
   0x1   :  { %4261 = sst [smem:[#allocation19_spill]] %s4230_s0 }
   0x2   :  { %4262 = sst [smem:[#allocation20_spill]] %s4231_s1 }
   0x3   :  { %4263 = sst [smem:[#allocation21_spill]] %s4232_s2 }
   0x4   :  { %4264 = sst [smem:[#allocation22_spill]] %s4239_s9 }
   0x5   :  { %4265 = sst [smem:[#allocation23_spill]] %s4245_s15 }
   0x6   :  { %4266 = sst [smem:[#allocation24_spill]] %s4246_s16 }
   0x7   :  { %4267 = sst [smem:[#allocation25_spill]] %s4247_s17 }
   0x8   :  { %4268 = sst [smem:[#allocation26_spill]] %s4248_s18 }
   0x9   :  { %s4269_s29 = sld [smem:[#allocation19_spill]] }
   0xf   :  { %s24_s9 = sshll.u32 %s4269_s29, 4  ;;  %s25_s9 = int_to_ptr.vmem [resolvable:$true] %s24_s9 }
  0x10   :  { %s3341_s30 = scalar_lea.vmem %s25_s9, 16  ;;  %p3346_p1 = scmp.lt.s32.totalorder %s25_s9, %s25_s9 }
  0x11   :  { %p3342_p0 = scmp.ne.s32.totalorder %s25_s9, %s3341_s30  ;;  %p3347_p2 = scmp.lt.s32.totalorder %s3341_s30, %s3341_s30 }
  0x13   :  { %p3348_p3 = por %p3347_p2, %p3346_p1 }
  0x15   :  { %p3349_p4 = pnand %p3348_p3, %p3342_p0 }
  0x17   :  { %3352 = shalt.err (!%p3349_p4)  }
  0x18   :  { %s3447_s0 = smov [#allocation3]  }
  0x19   :  { %27 = dma.vmem_to_smem %s25_s9, 16, %s3447_s0, [#allocation2] }
  0x1a   :  { %3421 = dma.done.wait [#allocation2], 16 }
  0x1b   :  { %3422 = vsyncadd [#allocation2], 4294967280 }
  0x1c   :  { %29 = sfence }
  0x1d   :  { %30 = vsyncpa [#allocation5], 0 }
  0x1e   :  { %32 = vsyncpa [#allocation5 + $0x1], 0 }
  0x1f   :  { %33 = vsyncpa [#allocation7], 0 }
  0x20   :  { %35 = vsyncpa [#allocation7 + $0x1], 0  ;;  %s3553_s19 = smov 0   ;;  %s3555_s1 = smov 0  }
  0x21   :  { %s3557_s20 = smov 0   ;;  %s3559_s21 = smov 0  }
  0x22 LB: > { %4270 = sst [smem:[#allocation11_spill]] %s3433_s19  ;;  %s3574_s9 = sadd.s32 4294967295, %s3445_s21   ;;  %s3445_s21 = sphi %s3559_s21, %s4295_s21   ;;  %s3441_s20 = sphi %s3557_s20, %s4297_s20   ;;  %s3437_s1 = sphi %s3555_s1, %s4299_s1   ;;  %s3433_s19 = sphi %s3553_s19, %s4298_s19  }
  0x23   : > { %4271 = sst [smem:[#allocation12_spill]] %s3441_s20  ;;  %s2916_s22 = sadd.s32 4294967294, %s3445_s21  }
  0x24   : > { %4272 = sst [smem:[#allocation13_spill]] %s3445_s21  ;;  %s3578_s2 = sadd.s32 1, %s3445_s21  }
  0x25   : > { %4273 = sst [smem:[#allocation14_spill]] %s3574_s9  ;;  %s414_s23 = sadd.s32 1, %s3441_s20 }
  0x26   : > { %4274 = sst [smem:[#allocation15_spill]] %s3578_s2  ;;  %s411_s24 = ssub.s32 %s3445_s21, %s3578_s2 }
  0x27   : > { %p424_p5 = scmp.ne.s32.totalorder %s3441_s20, %s3437_s1  ;;  %p412_p6 = scmp.eq.s32.totalorder %s411_s24, 0 }
  0x28   : > { %p425_p7 = scmp.eq.s32.totalorder %s3574_s9, 1  ;;  %p430_p8 = scmp.ne.s32.totalorder %s3437_s1, %s3433_s19 }
  0x29   : > { %p431_p9 = scmp.eq.s32.totalorder %s2916_s22, 1  ;;  %p2919_p12 = scmp.ge.s32.totalorder %s3445_s21, 1 }
  0x2a   : > { %s3589_s25 = scalar_select %p412_p6, %s3441_s20, %s414_s23  }
  0x2b   : > { %p3591_p10 = por %p425_p7, %p424_p5  ;;  %p3595_p11 = por %p431_p9, %p430_p8 }
  0x2c   : > { %4275 = sst [smem:[#allocation16_spill]] %s3589_s25  ;;  %p560_p13 = scmp.lt.s32.totalorder %s3445_s21, 3 }
  0x2d   : > { %s4276_s26 = scalar_select %p3591_p10, 1, 0 }
  0x2e   : > { %s4278_s27 = scalar_select %p3595_p11, 1, 0 }
  0x2f   : > { %4277 = sst [smem:[#allocation17_spill]] %s4276_s26  ;;  %p561_p0 = pnand %p2919_p12, %p560_p13 }
  0x30   : > { %4279 = sst [smem:[#allocation18_spill]] %s4278_s27  ;;  %s2922_s28 = sshll.u32 (!%p561_p0), %s3574_s9, 1 }
  0x31   : > { %564 = sbr.rel (%p561_p0) target bundleno = 2232 (0x8b8), region = 84  ;;  %s3603_s29 = sshll.u32 (!%p561_p0), %s3574_s9, 4 }
  0x32   : > { %p644_p1 = scmp.lt.s32.totalorder (!%p561_p0), %s2922_s28, 3  ;;  %s710_s30 = sld [smem:[#allocation3 + %s3603_s29]] (!%p561_p0) }
  0x33   : > { %s716_s0 = sadd.s32 (!%p561_p0), 1, %s3603_s29  ;;  %s723_s22 = sadd.s32 (!%p561_p0), 2, %s3603_s29 }
  0x34   : > { %s717_s23 = sld [smem:[#allocation3 + %s716_s0]] (!%p561_p0)  ;;  %s730_s24 = sadd.s32 (!%p561_p0), 3, %s3603_s29 }
  0x35   : > { %s724_s20 = sld [smem:[#allocation3 + %s723_s22]] (!%p561_p0)  ;;  %s737_s17 = sadd.s32 (!%p561_p0), 4, %s3603_s29 }
  0x36   : > { %v704_v0 = vlaneseq  ;;  %v3448_v1 = vmov 0.0   ;;  %vm3449_vm0 = vmmov 0   ;;  %s4301_s28 = smov (!%p644_p1, %s2922_s28), 3  ;;  %v3450_v3 = vmov 0   ;;  %s4280_s19 = sld [smem:[#allocation20_spill]]  ;;  %v3790_v51 = vld [vmem:[%s4238_s8] sm:$0xff] }
  0x37   : > { %3091 = vmatprep.subr.bf16.mxu0 %v3448_v1  ;;  %3097 = vmatprep.subr.bf16.mxu1 %v3448_v1  ;;  %s3622_s25 = sshll.u32 %s4301_s28, 3  ;;  %s4281_s26 = sld [smem:[#allocation21_spill]]  ;;  %v3797_v53 = vld [vmem:[%s4237_s7] sm:$0xff]  ;;  %v3803_v55 = vld [vmem:[%s4241_s11 + $0x18] sm:$0xff]  ;;  %v3818_v59 = vld [vmem:[%s4237_s7 + $0x8] sm:$0xff] }
  0x38   : > { %3093 = vmatprep.mubr.msk.bf16.mxu0 %vm3449_vm0, %v3448_v1  ;;  %3099 = vmatprep.mubr.msk.bf16.mxu1 %vm3449_vm0, %v3448_v1  ;;  %v3612_v2 = vshrl.u32 %v704_v0, 7  ;;  %v3618_v4 = vand.u32 127, %v704_v0  ;;  %s3642_s16 = scalar_lea.vmem %s4233_s3, %s3622_s25  ;;  %v711_v6 = vstv %s710_s30  ;;  %s3652_s18 = sld [smem:[#allocation3 + %s737_s17]]  ;;  %v3824_v60 = vld [vmem:[%s4238_s8 + $0x8] sm:$0xff]  ;;  %v3829_v61 = vld [vmem:[%s4241_s11 + $0x10] sm:$0xff] }
  0x39   : > { %3303 = vset.pattern.permute.xlu0 %v3450_v3  ;;  %3304 = vset.pattern.permute.xlu1 %v3450_v3  ;;  %v3306_v7 = vld [vmem:[%s3642_s16] sm:$0xff]   ;;  %s744_s15 = sadd.s32 5, %s3603_s29  ;;  %s758_s30 = sadd.s32 7, %s3603_s29  ;;  %v3841_v62 = vld [vmem:[%s4237_s7 + $0x10] sm:$0xff]  ;;  %v3849_v63 = vld [vmem:[%s4241_s11 + $0x8] sm:$0xff] }
  0x3a   : > { %vm709_vm1 = vcmp.eq.s32.totalorder %v3612_v2, 0  ;;  %vm712_vm2 = vcmp.eq.s32.totalorder %v3618_v4, %v711_v6  ;;  %vm715_vm4 = vcmp.eq.s32.totalorder %v3612_v2, 1  ;;  %v718_v10 = vstv %s717_s23  ;;  %s3658_s2 = sld [smem:[#allocation3 + %s744_s15]]  ;;  %3098 = vmatpush3.bf16.msra.mxu1 %v3306_v7  ;;  %s3673_s23 = sadd.s32 8, %s3603_s29  ;;  %v3868_v3 = vld [vmem:[%s4241_s11] sm:$0xff] }
  0x3b   : > { %vm713_vm3 = vmand %vm709_vm1, %vm712_vm2  ;;  %vm722_vm5 = vcmp.eq.s32.totalorder %v3612_v2, 2  ;;  %vm719_vm6 = vcmp.eq.s32.totalorder %v3618_v4, %v718_v10  ;;  %v725_v11 = vstv %s724_s20  ;;  %vm729_vm9 = vcmp.eq.s32.totalorder %v3612_v2, 3  ;;  %s3670_s22 = sld [smem:[#allocation3 + %s758_s30]]  ;;  %3109 = vmatprep.subr.mxu1 %v3448_v1  ;;  %s1762_s0 = sadd.s32 2, %s3673_s23 }
  0x3c   : > { %s3628_s21 = scalar_lea.vmem %s4280_s19, %s3622_s25  ;;  %s3644_s19 = sld [smem:[#allocation3 + %s730_s24]]  ;;  %v714_v9 = vsel %vm713_vm3, 1.0, %v3448_v1  ;;  %vm720_vm7 = vmand %vm715_vm4, %vm719_vm6  ;;  %vm726_vm8 = vcmp.eq.s32.totalorder %v3618_v4, %v725_v11  ;;  %vm736_vm12 = vcmp.eq.s32.totalorder %v3612_v2, 4  ;;  %vm743_vm14 = vcmp.eq.s32.totalorder %v3612_v2, 5 }
  0x3d   : > { %s3634_s9 = scalar_lea.vmem %s4281_s26, %s3622_s25  ;;  %v909_v8 = vld [vmem:[%s3628_s21] sm:$0xff]  ;;  %s751_s26 = sadd.s32 6, %s3603_s29  ;;  %v721_v12 = vsel %vm720_vm7, 1.0, %v714_v9  ;;  %vm727_vm10 = vmand %vm722_vm5, %vm726_vm8  ;;  %vm750_vm2 = vcmp.eq.s32.totalorder %v3612_v2, 6  ;;  %vm757_vm7 = vcmp.eq.s32.totalorder %v3612_v2, 7 }
  0x3e   : > { %v3305_v5 = vld [vmem:[%s3634_s9] sm:$0xff]   ;;  %3309 = vtanh.f32 %v909_v8  ;;  %s3663_s27 = sld [smem:[#allocation3 + %s751_s26]]  ;;  %s1756_s24 = sadd.s32 1, %s3673_s23  ;;  %v728_v14 = vsel %vm727_vm10, 1.0, %v721_v12  ;;  %v739_v16 = vstv %s3652_s18 }
  0x3f   : > { %3092 = vmatpush3.bf16.msra.mxu0 %v3305_v5  ;;  %s3680_s20 = sld [smem:[#allocation3 + %s3673_s23]]  ;;  %s1768_s17 = sadd.s32 3, %s3673_s23  ;;  %vm740_vm15 = vcmp.eq.s32.totalorder %v3618_v4, %v739_v16 }
  0x40   : > { %3103 = vmatprep.subr.bf16.mxu0 %v3448_v1  ;;  %s3685_s29 = sld [smem:[#allocation3 + %s1756_s24]]  ;;  %v746_v18 = vstv %s3658_s2  ;;  %s1774_s26 = sadd.s32 4, %s3673_s23  ;;  %vm741_vm3 = vmand %vm736_vm12, %vm740_vm15 }
  0x41   : > { %s3704_s15 = sld [smem:[#allocation3 + %s1768_s17]]  ;;  %vm747_vm6 = vcmp.eq.s32.totalorder %v3618_v4, %v746_v18  ;;  %s1780_s30 = sadd.s32 5, %s3673_s23  ;;  %v760_v21 = vstv %s3670_s22 }
  0x42   : > { %v732_v13 = vstv %s3644_s19  ;;  %s3696_s19 = sld [smem:[#allocation3 + %s1762_s0]]  ;;  %vm748_vm8 = vmand %vm743_vm14, %vm747_vm6  ;;  %s1786_s24 = sadd.s32 6, %s3673_s23  ;;  %vm773_vm6 = vcmask 130048  }
  0x43   : > { %vm733_vm11 = vcmp.eq.s32.totalorder %v3618_v4, %v732_v13  ;;  %s3712_s18 = sld [smem:[#allocation3 + %s1774_s26]]  ;;  %s1792_s0 = sadd.s32 7, %s3673_s23 }
  0x44   : > { %vm3690_vm13 = vmand %vm729_vm9, %vm733_vm11  ;;  %v753_v19 = vstv %s3663_s27  ;;  %s3719_s2 = sld [smem:[#allocation3 + %s1780_s30]]  ;;  %s2931_s23 = sshll.u32 %s4301_s28, 2 }
  0x45   : > { %v735_v17 = vsel %vm3690_vm13, 1.0, %v728_v14  ;;  %vm754_vm10 = vcmp.eq.s32.totalorder %v3618_v4, %v753_v19  ;;  %vm761_vm13 = vcmp.eq.s32.totalorder %v3618_v4, %v760_v21  ;;  %v1752_v23 = vstv %s3680_s20  ;;  %s3726_s27 = sld [smem:[#allocation3 + %s1786_s24]]  ;;  %s3935_s24 = scalar_lea.vmem %s4235_s5, %s4301_s28 }
  0x46   : > { %v742_v20 = vsel %vm741_vm3, 1.0, %v735_v17  ;;  %vm755_vm11 = vmand %vm750_vm2, %vm754_vm10  ;;  %vm1753_vm3 = vcmp.eq.s32.totalorder %v3618_v4, %v1752_v23  ;;  %v1758_v25 = vstv %s3685_s29  ;;  %s3733_s22 = sld [smem:[#allocation3 + %s1792_s0]]  ;;  %s3778_s29 = scalar_lea.vmem %s4236_s6, %s3622_s25  ;;  %v3883_v17 = vld [vmem:[%s4240_s10 + $0x8] sm:$0xff] }
  0x47   : > { %v749_v22 = vsel %vm748_vm8, 1.0, %v742_v20  ;;  %vm762_vm15 = vmand %vm757_vm7, %vm761_vm13  ;;  %vm1759_vm10 = vcmp.eq.s32.totalorder %v3618_v4, %v1758_v25  ;;  %v1770_v30 = vstv %s3704_s15  ;;  %v3781_v44 = vld [vmem:[%s3778_s29] sm:$0xff]  ;;  %s4285_s30 = sld [smem:[#allocation24_spill]] }
  0x48   : > { %v756_v24 = vsel %vm755_vm11, 1.0, %v749_v22  ;;  %vm1754_vm8 = vmand %vm709_vm1, %vm1753_vm3  ;;  %v1764_v27 = vstv %s3696_s19  ;;  %vm1771_vm1 = vcmp.eq.s32.totalorder %v3618_v4, %v1770_v30  ;;  %s4289_s20 = sld [smem:[#allocation26_spill]] }
  0x49   : > { %v763_v26 = vsel %vm762_vm15, 1.0, %v756_v24  ;;  %v1755_v29 = vsel %vm1754_vm8, 1.0, %v3448_v1  ;;  %vm1760_vm11 = vmand %vm715_vm4, %vm1759_vm10  ;;  %vm1765_vm13 = vcmp.eq.s32.totalorder %v3618_v4, %v1764_v27  ;;  %v1776_v33 = vstv %s3712_s18  ;;  %s667_s18 = scalar_lea.vmem %s4234_s4, %s2931_s23  ;;  %v3891_v27 = vld [vmem:[%s4242_s12] ss:$0 sm:$0xff] }
  0x4a   : > { %v764_v28 = vpack.c.bf16 %v763_v26, %v763_v26  ;;  %v1761_v32 = vsel %vm1760_vm11, 1.0, %v1755_v29  ;;  %vm1766_vm15 = vmand %vm722_vm5, %vm1765_vm13  ;;  %vm1777_vm4 = vcmp.eq.s32.totalorder %v3618_v4, %v1776_v33  ;;  %v1782_v35 = vstv %s3719_s2  ;;  %v3862_v0 = vld [vmem:[%s667_s18] sm:$0xff]   ;;  %v3911_v33 = vld [vmem:[%s4243_s13 + $0x10] sm:$0xff]  ;;  %s4286_s2 = sld [smem:[#allocation23_spill]]  ;;  %s3451_s18 = smov [#allocation6]  }
  0x4b   : > { %v3310_v31 = vpop.eup %3309  ;;  %v1767_v34 = vsel %vm1766_vm15, 1.0, %v1761_v32  ;;  %vm1772_vm3 = vmand %vm729_vm9, %vm1771_vm1  ;;  %vm1783_vm8 = vcmp.eq.s32.totalorder %v3618_v4, %v1782_v35  ;;  %v1788_v38 = vstv %s3726_s27 }
  0x4c   : > { %3094 = vmatmul.mubr.msk.bf16.vlgmr.msra.gmra.mxu0 %vm773_vm6, %v764_v28  ;;  %3100 = vmatmul.mubr.msk.bf16.vlgmr.msra.gmra.mxu1 %vm773_vm6, %v764_v28  ;;  %v775_v36 = vsel %vm773_vm6, %v764_v28, 0  ;;  %v1773_v37 = vsel %vm1772_vm3, 1.0, %v1767_v34  ;;  %vm1778_vm5 = vmand %vm736_vm12, %vm1777_vm4  ;;  %vm1789_vm10 = vcmp.eq.s32.totalorder %v3618_v4, %v1788_v38  ;;  %v1794_v40 = vstv %s3733_s22  ;;  %v3921_v38 = vld [vmem:[%s4243_s13 + $0x8] sm:$0xff]  ;;  %s4284_s22 = sld [smem:[#allocation22_spill]] }
  0x4d   : > { %913 = vperm.xlu0 %3303, %v3310_v31   ;;  %3104 = vmatpush3.bf16.xpose.msra.mxu0 %v775_v36  ;;  %v1779_v39 = vsel %vm1778_vm5, 1.0, %v1773_v37  ;;  %vm1784_vm9 = vmand %vm743_vm14, %vm1783_vm8  ;;  %vm1795_vm11 = vcmp.eq.s32.totalorder %v3618_v4, %v1794_v40  ;;  %vm918_vm14 = vcmask 261120   ;;  %v1191_v4 = vunpack.c.l.bf16 %v3862_v0  ;;  %v3899_v31 = vld [vmem:[%s4243_s13 + $0x18] sm:$0xff]  ;;  %v1483_v40 = vld [vmem:[%s3935_s24] sm:$0x1] }
  0x4e   : > { %3105 = vmatprep.mubr.msk.bf16.mxu0 %vm3449_vm0, %v3448_v1  ;;  %3111 = vmatprep.mubr.msk.f32.mxu1 %vm3449_vm0, %v3448_v1  ;;  %v1785_v41 = vsel %vm1784_vm9, 1.0, %v1779_v39  ;;  %vm1790_vm12 = vmand %vm750_vm2, %vm1789_vm10  ;;  %vm1011_vm2 = vcmask 64512   ;;  %v3929_v39 = vld [vmem:[%s4243_s13] sm:$0xff]  ;;  %s4290_s17 = smov %s4289_s20 }
  0x4f   : > { %v1791_v42 = vsel %vm1790_vm12, 1.0, %v1785_v41  ;;  %vm1796_vm13 = vmand %vm757_vm7, %vm1795_vm11  ;;  %3120 = vmatprep.subr.mxu0 %v3781_v44 }
  0x50   : > { %v3772_v43 = vsel %vm1796_vm13, 1.0, %v1791_v42 }
  0xc8   : > { %v914_v45 = vpop.permute.xlu0 %913 }
 0x10c   : > { %v3784_v46 = vpop.f32.mrf.mxu0  ;;  %v859_v47 = vpop.f32.mrf.mxu1 }
 0x10d   : > { %v865_v48 = vpack.c.bf16 %v859_v47, %v859_v47  ;;  %v916_v49 = vmul.f32 %v914_v45, %v3784_v46  ;;  %v3948_v45 = vld [vmem:[%s4284_s22] sm:$0xff]  ;;  %v3307_v47 = vld [vmem:[%s3642_s16 + $0x8] sm:$0xff]  }
 0x10e   : > { %v3095_v50 = vpop.f32.mrf.mxu0  ;;  %v3101_v52 = vpop.f32.mrf.mxu1 }
 0x10f   : > { %3106 = vmatmul.mubr.msk.bf16.vlgmr.msra.gmra.mxu0 %vm773_vm6, %v865_v48  ;;  %3110 = vmatpush3.xpose.msk.msra.mxu1 %vm918_vm14, %v916_v49  ;;  %v3958_v48 = vpack.c.bf16 %v3772_v43, %v3772_v43  ;;  %v3969_v52 = vld [vmem:[%s4240_s10] sm:$0xff] }
 0x110   : > { %v814_v54 = vpop.f32.mrf.mxu0  ;;  %3130 = vmatprep.subr.mxu1 %v3448_v1  ;;  %3121 = vmatpush3.msra.mxu0 %v3781_v44  ;;  %v862_v56 = vpop.f32.mrf.mxu1 }
 0x111   : > { %3122 = vmatprep.mubr.msk.f32.mxu0 %vm1011_vm2, %v3790_v51  ;;  %3125 = vmatprep.subr.mxu0 %v3448_v1 }
 0x112   : > { %v3096_v57 = vpop.f32.mrf.mxu0  ;;  %3112 = vmatmul.mubr.msk.f32.vlgmr.msra.gmra.mxu1 %vm918_vm14, %v3797_v53  ;;  %v3102_v58 = vpop.f32.mrf.mxu1 }
 0x113   : > { %3131 = vmatpush3.xpose.msk.msra.mxu1 %vm918_vm14, %v3803_v55  ;;  %3114 = vmatprep.mubr.msk.f32.mxu1 %vm3449_vm0, %v3448_v1  ;;  %v3980_v58 = vld [vmem:[%s4244_s14] sm:$0x1] }
 0x114   : > { %3132 = vmatprep.subr.mxu1 %v3448_v1 }
 0x116   : > { %3115 = vmatmul.mubr.msk.f32.gmra.mxu1 %vm918_vm14, %v3818_v59 }
 0x117   : > { %3123 = vmatmul.mubr.msk.f32.vlgmr.msra.gmra.mxu0 %vm1011_vm2, %v3824_v60  ;;  %3133 = vmatpush3.xpose.msk.msra.mxu1 %vm918_vm14, %v3829_v61 }
 0x118   : > { %3134 = vmatprep.subr.mxu1 %v3448_v1  ;;  %3117 = vmatprep.mubr.msk.f32.mxu1 %vm3449_vm0, %v3448_v1 }
 0x119   : > { %3127 = vmatprep.mubr.msk.f32.mxu0 %vm3449_vm0, %v3448_v1 }
 0x11a   : > { %3118 = vmatmul.mubr.msk.f32.gmra.mxu1 %vm918_vm14, %v3841_v62 }
 0x11b   : > { %3135 = vmatpush3.xpose.msk.msra.mxu1 %vm918_vm14, %v3849_v63  ;;  %3138 = vmatprep.mubr.msk.f32.mxu1 %vm3449_vm0, %v3448_v1 }
 0x11c   : > { %3136 = vmatprep.subr.mxu1 %v3448_v1 }
 0x11f   : > { %3137 = vmatpush3.xpose.msk.msra.mxu1 %vm918_vm14, %v3868_v3 }
 0x120   : > { %3141 = vmatprep.subr.mxu1 %v3448_v1 }
 0x122   : > { %3139 = vmatmul.mubr.msk.f32.vlgmr.msra.gmra.mxu1 %vm918_vm14, %v1191_v4 }
 0x123   : > { %3143 = vmatprep.mubr.msk.f32.mxu1 %vm3449_vm0, %v3448_v1 }
 0x1cf   : > { %v903_v5 = vpop.f32.mrf.mxu0 }
 0x1d0   : > { %v1432_v6 = vsel %vm1011_vm2, %v903_v5, 0.0 }
 0x1d1   : > { %v1433_v7 = vrot.slane %v1432_v6, 4  ;;  %v3107_v8 = vpop.f32.mrf.mxu0 }
 0x1d2   : > { %v3878_v9 = vpop.f32.mrf.mxu1 }
 0x1d3   : > { %v1434_v10 = vadd.f32 %v1433_v7, %v1432_v6  ;;  %v906_v11 = vpop.f32.mrf.mxu0 }
 0x1d4   : > { %v3113_v12 = vpop.f32.mrf.mxu1 }
 0x1d5   : > { %v1435_v13 = vrot.slane %v1434_v10, 2  ;;  %v3108_v14 = vpop.f32.mrf.mxu0 }
 0x1d6   : > { %v1002_v15 = vpop.f32.mrf.mxu1  ;;  %v1572_v14 = vsub.s32 0, %v3612_v2  ;;  %v2966_v2 = vld [vmem:[%s4286_s2] ss:$0 sm:$0xff] }
 0x1d7   : > { %v1436_v16 = vadd.f32 %v1435_v13, %v1434_v10  ;;  %v3124_v18 = vpop.f32.mrf.mxu0 }
 0x1d8   : > { %v1101_v19 = vadd.f32 %v3124_v18, %v1002_v15  ;;  %v3116_v20 = vpop.f32.mrf.mxu1 }
 0x1d9   : > { %v1437_v21 = vrot.slane %v1436_v16, 1  ;;  %v1084_v49 = vpop.f32.mrf.mxu0 }
 0x1da   : > { %v1102_v22 = vadd.f32 %v1101_v19, %v3883_v17  ;;  %v3886_v23 = vpop.f32.mrf.mxu1  ;;  %v1093_v50 = vadd.f32 %v1084_v49, %v3878_v9  ;;  %v3986_v9 = vld [vmem:[%s4240_s10 + $0x10] sm:$0xff]  ;;  %v3308_v49 = vld [vmem:[%s3634_s9 + $0x8] sm:$0xff]  }
 0x1db   : > { %v1438_v24 = vadd.f32 %v1437_v21, %v1436_v16 }
 0x1dc   : > { %v2948_v25 = vmul.f32 -1.442695, %v1102_v22  ;;  %v3119_v26 = vpop.f32.mrf.mxu1  ;;  %v1094_v54 = vadd.f32 %v1093_v50, %v3969_v52  ;;  %v2979_v22 = vld [vmem:[%s3628_s21 + $0x8] sm:$0xff]  ;;  %s4000_s21 = sand.u32 1, %s3437_s1   ;;  %v1809_v50 = vsel %vm773_vm6, %v3958_v48, 0 }
 0x1dd   : > { %3311 = vrsqrt.f32 %v1438_v24  ;;  %vm1439_vm7 = vcmp.gt.f32.partialorder %v1438_v24, 0.0  ;;  %s2920_s25 = sshll.u32 %s4000_s21, 4 }
 0x1de   : > { %3313 = vpow2.f32 %v2948_v25  ;;  %v2947_v43 = vmul.f32 -1.442695, %v1094_v54  ;;  %s4005_s15 = scalar_lea.vmem [#allocation6], %s2920_s25  ;;  %s4136_s0 = scalar_lea.vmem [#allocation4], %s2920_s25 }
 0x1df   : > { %s2765_s22 = sshll.u32 %s4005_s15, 4  ;;  %s2736_s25 = scalar_lea.sflag [#allocation7], %s4000_s21  ;;  %s4142_s22 = int_to_ptr.vmem [resolvable:$true] %s2765_s22 }
 0x1e0   : > { %s3353_s26 = scalar_lea.vmem %s4142_s22, 256 }
 0x1e1   : > { %p3354_p2 = scmp.ne.s32.totalorder %s4142_s22, %s3353_s26 }
 0x1e2   : > { %v1279_v28 = vpop.f32.mrf.mxu1 }
 0x1e3   : > { %v1280_v29 = vadd.f32 %v3891_v27, %v1279_v28  ;;  %p3355_p3 = pnand %p3354_p2, %p3591_p10 }
 0x1e4   : > { %v3140_v30 = vpop.f32.mrf.mxu1 }
 0x1e5   : > { %3142 = vmatpush3.xpose.msk.msra.mxu1 %vm918_vm14, %v1280_v29  ;;  %p3356_p4 = pneg %p3355_p3 }
 0x1e6   : > { %3151 = vmatprep.subr.mxu1 %v3448_v1 }
 0x1e8   : > { %3144 = vmatmul.mubr.msk.f32.vlgmr.msra.gmra.mxu1 %vm918_vm14, %v3784_v46 }
 0x1e9   : > { %3152 = vmatpush3.xpose.msk.msra.mxu1 %vm918_vm14, %v3899_v31  ;;  %3159 = vmatprep.mubr.msk.f32.mxu1 %vm3449_vm0, %v3448_v1 }
 0x1ea   : > { %v3312_v32 = vpop.eup %3311  ;;  %3153 = vmatprep.subr.mxu1 %v3448_v1 }
 0x1eb   : > { %v3314_v34 = vpop.eup %3313  ;;  %v1441_v35 = vsel %vm1439_vm7, %v3312_v32, 0.0 }
 0x1ec   : > { %v3913_v36 = vmul.f32 %v1441_v35, %v903_v5  ;;  %v1106_v37 = vadd.f32 1.0, %v3314_v34  ;;  %1443 = vxpose.xlu0.b32.start.end [1/1] (short) (narrow) %v1441_v35, 8 }
 0x1ed   : > { %3154 = vmatpush3.xpose.msk.msra.mxu1 %vm918_vm14, %v3911_v33 }
 0x1ee   : > { %3315 = vrcp.f32 %v1106_v37  ;;  %3155 = vmatprep.subr.mxu1 %v3448_v1 }
 0x1ef   : > { %3317 = vpow2.f32 %v2947_v43  ;;  %v4034_v43 = vld [vmem:[%s3778_s29 + $0x8] sm:$0xff] }
 0x1f1   : > { %3156 = vmatpush3.xpose.msk.msra.mxu1 %vm918_vm14, %v3921_v38 }
 0x1f2   : > { %3157 = vmatprep.subr.mxu1 %v3448_v1 }
 0x1f5   : > { %3158 = vmatpush3.xpose.msk.msra.mxu1 %vm918_vm14, %v3929_v39 }
 0x1f6   : > { %3178 = vmatprep.subr.bf16.mxu1 %v3448_v1 }
 0x1f8   : > { %3160 = vmatmul.mubr.msk.f32.vlgmr.msra.gmra.mxu1 %vm918_vm14, %v1483_v40 }
 0x1f9   : > { %3180 = vmatprep.mubr.msk.bf16.mxu1 %vm3449_vm0, %v3448_v1  ;;  %3179 = vmatpush3.bf16.msra.mxu1 %v3307_v47 }
 0x1fa   : > { %3190 = vmatprep.subr.mxu1 %v3448_v1 }
 0x1fb   : > { %v3316_v41 = vpop.eup %3315 }
 0x1fc   : > { %v1109_v42 = vmul.f32 %v3316_v41, %v3781_v44  ;;  %3181 = vmatmul.mubr.msk.bf16.vlgmr.msra.gmra.mxu1 %vm773_vm6, %v3958_v48  ;;  %v3318_v4 = vpop.eup %3317 }
 0x1fd   : > { %3192 = vmatprep.mubr.msk.f32.mxu1 %vm3449_vm0, %v3448_v1  ;;  %v1098_v7 = vadd.f32 1.0, %v3318_v4 }
 0x1fe   : > { %3126 = vmatpush3.msra.mxu0 %v1109_v42 }
 0x1ff   : > { %3128 = vmatmul.mubr.msk.f32.vlgmr.msra.gmra.mxu0 %vm1011_vm2, %v3948_v45  ;;  %3146 = vmatprep.subr.mxu0 %v3448_v1 }
 0x200   : > { %3148 = vmatprep.mubr.msk.f32.mxu0 %vm3449_vm0, %v3448_v1 }
 0x268   : > { %v1459_v28 = vpop.trf.xlu0 }
 0x2a8   : > { %v1355_v56 = vpop.f32.mrf.mxu1 }
 0x2a9   : > { %3147 = vmatpush3.xpose.msk.msra.mxu0 %vm1011_vm2, %v1355_v56 }
 0x2aa   : > { %v3145_v57 = vpop.f32.mrf.mxu1  ;;  %3162 = vmatprep.subr.mxu0 %v3448_v1 }
 0x2ac   : > { %3149 = vmatmul.mubr.msk.f32.vlgmr.msra.gmra.mxu0 %vm1011_vm2, %v1355_v56 }
 0x2ad   : > { %3164 = vmatprep.mubr.msk.f32.mxu0 %vm3449_vm0, %v3448_v1 }
 0x2b8   : > { %v1565_v5 = vpop.f32.mrf.mxu1 }
 0x2b9   : > { %v1566_v6 = vadd.f32 %v1565_v5, %v3980_v58 }
 0x2ba   : > { %v3161_v8 = vpop.f32.mrf.mxu1 }
 0x2bb   : > { %3319 = vtanh.f32 %v1566_v6 }
 0x2bc   : > { %3321 = vrcp.f32 %v1098_v7  ;;  %v1894_v30 = vpop.f32.mrf.mxu1 }
 0x2bd   : > { %v1900_v54 = vpack.c.bf16 %v1894_v30, %v1894_v30 }
 0x2be   : > { %v3182_v32 = vpop.f32.mrf.mxu1 }
 0x2bf   : > { %v1179_v10 = vpop.f32.mrf.mxu0 }
 0x2c0   : > { %v1183_v11 = vadd.f32 %v1179_v10, %v3886_v23  ;;  %v1897_v34 = vpop.f32.mrf.mxu1 }
 0x2c1   : > { %v3129_v12 = vpop.f32.mrf.mxu0 }
 0x2c2   : > { %v1184_v13 = vadd.f32 %v1183_v11, %v3986_v9 }
 0x2c4   : > { %3323 = vtanh.f32 %v1184_v13 }
 0x2c5   : > { %3325 = vtanh.f32 %v2979_v22 }
 0x2c8   : > { %v3320_v15 = vpop.eup %3319 }
 0x2c9   : > { %v1573_v16 = vrot.slane %v3320_v15, %v1572_v14  ;;  %v3322_v18 = vpop.eup %3321 }
 0x2ca   : > { %v1186_v21 = vsub.f32 1.0, %v3322_v18 }
 0x2cb   : > { %v1574_v19 = vmul.f32 %v1573_v16, %v3784_v46  ;;  %v3183_v46 = vpop.f32.mrf.mxu1 }
 0x2cc   : > { %v1187_v23 = vmul.f32 %v1186_v21, %v3781_v44 }
 0x2cd   : > { %v1575_v20 = vsel %vm918_vm14, %v1574_v19, 0.0 }
 0x2ce   : > { %1576 = vadd.xlane.f32.xlu1 %v1575_v20 }
 0x2d1   : > { %v3324_v24 = vpop.eup %3323 }
 0x2d2   : > { %v1188_v25 = vmul.f32 %v3324_v24, %v3322_v18  ;;  %v3326_v29 = vpop.eup %3325  ;;  %v2209_v18 = vunpack.c.h.bf16 %v3862_v0 }
 0x2d4   : > { %v1189_v26 = vadd.f32 %v1188_v25, %v1187_v23 }
 0x2df   : > { %1477 = vperm.xlu1 %3304, %v1459_v28  }
 0x2e3   : > { %1949 = vperm.xlu1 %3304, %v3326_v29  }
 0x357   : > { %v1577_v35 = vpop.xlane.xlu1 %1576 }
 0x358   : > { %3163 = vmatpush3.msra.mxu0 %v1577_v35 }
 0x359   : > { %3167 = vmatprep.subr.mxu0 %v3448_v1 }
 0x35b   : > { %v1478_v37 = vpop.permute.xlu1 %1477 }
 0x35c   : > { %v1480_v44 = vmul.f32 %v1478_v37, %v3913_v36  ;;  %v4015_v36 = vld [vmem:[%s4285_s30] sm:$0xff] }
 0x35e   : > { %v1481_v40 = vadd.f32 %v1480_v44, %v1189_v26 }
 0x36c   : > { %v1428_v41 = vpop.f32.mrf.mxu0 }
 0x36d   : > { %v1482_v42 = vadd.f32 %v1481_v40, %v1428_v41 }
 0x36e   : > { %v3150_v47 = vpop.f32.mrf.mxu0 }
 0x36f   : > { %1747 = vst.msk [vmem:[%s4005_s15] sm:$0xff] %vm1011_vm2, %v1482_v42  ;;  %3165 = vmatmul.mubr.msk.f32.vlgmr.msra.gmra.mxu0 %vm1011_vm2, %v1482_v42 }
 0x370   : > { %3168 = vmatpush3.msra.mxu0 %v1577_v35  ;;  %3169 = vmatprep.mubr.msk.f32.mxu0 %vm3449_vm0, %v3448_v1 }
 0x371   : > { %3172 = vmatprep.subr.bf16.mxu0 %v3448_v1 }
 0x373   : > { %3170 = vmatmul.mubr.msk.f32.vlgmr.msra.gmra.mxu0 %vm1011_vm2, %v4015_v36 }
 0x374   : > { %3173 = vmatpush3.bf16.msra.mxu0 %v3308_v49  ;;  %3174 = vmatprep.mubr.msk.bf16.mxu0 %vm3449_vm0, %v3448_v1 }
 0x375   : > { %3184 = vmatprep.subr.bf16.mxu0 %v3448_v1 }
 0x377   : > { %3175 = vmatmul.mubr.msk.bf16.vlgmr.msra.gmra.mxu0 %vm773_vm6, %v3958_v48 }
 0x378   : > { %3185 = vmatpush3.bf16.xpose.msra.mxu0 %v1809_v50  ;;  %3186 = vmatprep.mubr.msk.bf16.mxu0 %vm3449_vm0, %v3448_v1 }
 0x379   : > { %3201 = vmatprep.subr.mxu0 %v4034_v43 }
 0x37f   : > { %3187 = vmatmul.mubr.msk.bf16.vlgmr.msra.gmra.mxu0 %vm773_vm6, %v1900_v54 }
 0x380   : > { %3203 = vmatprep.mubr.msk.f32.mxu0 %vm1011_vm2, %v3790_v51  ;;  %3202 = vmatpush3.msra.mxu0 %v4034_v43  ;;  %v1950_v51 = vpop.permute.xlu1 %1949 }
 0x381   : > { %3206 = vmatprep.subr.mxu0 %v3448_v1 }
 0x387   : > { %3204 = vmatmul.mubr.msk.f32.vlgmr.msra.gmra.mxu0 %vm1011_vm2, %v3824_v60 }
 0x388   : > { %3208 = vmatprep.mubr.msk.f32.mxu0 %vm3449_vm0, %v3448_v1 }
 0x42f   : > { %v4043_v48 = vpop.f32.mrf.mxu0 }
 0x431   : > { %v3166_v56 = vpop.f32.mrf.mxu0 }
 0x433   : > { %v1733_v57 = vpop.f32.mrf.mxu0 }
 0x435   : > { %v3171_v4 = vpop.f32.mrf.mxu0 }
 0x437   : > { %v4045_v5 = vpop.f32.mrf.mxu0 }
 0x438   : > { %v1952_v6 = vmul.f32 %v1950_v51, %v4045_v5 }
 0x439   : > { %v3176_v7 = vpop.f32.mrf.mxu0 }
 0x43a   : > { %3191 = vmatpush3.xpose.msk.msra.mxu1 %vm918_vm14, %v1952_v6 }
 0x43b   : > { %v1848_v8 = vpop.f32.mrf.mxu0  ;;  %3211 = vmatprep.subr.mxu1 %v3448_v1 }
 0x43d   : > { %v3177_v60 = vpop.f32.mrf.mxu0  ;;  %3193 = vmatmul.mubr.msk.f32.vlgmr.msra.gmra.mxu1 %vm918_vm14, %v3797_v53 }
 0x43e   : > { %3195 = vmatprep.mubr.msk.f32.mxu1 %vm3449_vm0, %v3448_v1  ;;  %3212 = vmatpush3.xpose.msk.msra.mxu1 %vm918_vm14, %v3803_v55 }
 0x43f   : > { %v1938_v10 = vpop.f32.mrf.mxu0  ;;  %3213 = vmatprep.subr.mxu1 %v3448_v1 }
 0x440   : > { %v2432_v11 = vsel %vm1011_vm2, %v1938_v10, 0.0 }
 0x441   : > { %v2433_v12 = vrot.slane %v2432_v11, 4  ;;  %3196 = vmatmul.mubr.msk.f32.gmra.mxu1 %vm918_vm14, %v3818_v59  ;;  %v3188_v13 = vpop.f32.mrf.mxu0 }
 0x442   : > { %3214 = vmatpush3.xpose.msk.msra.mxu1 %vm918_vm14, %v3829_v61  ;;  %3198 = vmatprep.mubr.msk.f32.mxu1 %vm3449_vm0, %v3448_v1 }
 0x443   : > { %v2434_v53 = vadd.f32 %v2433_v12, %v2432_v11  ;;  %3215 = vmatprep.subr.mxu1 %v3448_v1  ;;  %v1941_v55 = vpop.f32.mrf.mxu0 }
 0x445   : > { %v2435_v15 = vrot.slane %v2434_v53, 2  ;;  %3199 = vmatmul.mubr.msk.f32.gmra.mxu1 %vm918_vm14, %v3841_v62  ;;  %v3189_v16 = vpop.f32.mrf.mxu0 }
 0x446   : > { %3216 = vmatpush3.xpose.msk.msra.mxu1 %vm918_vm14, %v3849_v63  ;;  %3219 = vmatprep.mubr.msk.f32.mxu1 %vm3449_vm0, %v3448_v1 }
 0x447   : > { %v2436_v59 = vadd.f32 %v2435_v15, %v2434_v53  ;;  %3217 = vmatprep.subr.mxu1 %v3448_v1  ;;  %v3205_v22 = vpop.f32.mrf.mxu0 }
 0x449   : > { %v2437_v61 = vrot.slane %v2436_v59, 1 }
 0x44a   : > { %3218 = vmatpush3.xpose.msk.msra.mxu1 %vm918_vm14, %v3868_v3 }
 0x44b   : > { %v2438_v19 = vadd.f32 %v2437_v61, %v2436_v59  ;;  %3243 = vmatprep.subr.mxu1 %v3448_v1 }
 0x44d   : > { %3327 = vrsqrt.f32 %v2438_v19  ;;  %3220 = vmatmul.mubr.msk.f32.vlgmr.msra.gmra.mxu1 %vm918_vm14, %v2209_v18  ;;  %vm2439_vm6 = vcmp.gt.f32.partialorder %v2438_v19, 0.0 }
 0x44e   : > { %3245 = vmatprep.mubr.msk.f32.mxu1 %vm3449_vm0, %v3448_v1 }
 0x45a   : > { %v3328_v62 = vpop.eup %3327 }
 0x45b   : > { %v2441_v63 = vsel %vm2439_vm6, %v3328_v62, 0.0 }
 0x45c   : > { %v4079_v20 = vmul.f32 %v2441_v63, %v1938_v10  ;;  %2443 = vxpose.xlu1.b32.start.end [1/1] (short) (narrow) %v2441_v63, 8 }
 0x4d8   : > { %v2459_v21 = vpop.trf.xlu1 }
 0x4d9   : > { %2477 = vperm.xlu1 %3304, %v2459_v21  }
 0x4dd   : > { %1739 = vperm.xlu1 %3304, %v1733_v57  }
 0x4fd   : > { %v2024_v0 = vpop.f32.mrf.mxu1 }
 0x4ff   : > { %v3194_v3 = vpop.f32.mrf.mxu1 }
 0x501   : > { %v2029_v24 = vpop.f32.mrf.mxu1 }
 0x502   : > { %v2121_v23 = vadd.f32 %v3205_v22, %v2029_v24 }
 0x503   : > { %v3197_v25 = vpop.f32.mrf.mxu1 }
 0x504   : > { %v2122_v26 = vadd.f32 %v2121_v23, %v3883_v17  ;;  %v2104_v17 = vpop.f32.mrf.mxu0 }
 0x505   : > { %v2034_v28 = vpop.f32.mrf.mxu1 }
 0x506   : > { %v2988_v29 = vmul.f32 -1.442695, %v2122_v26 }
 0x507   : > { %v3200_v30 = vpop.f32.mrf.mxu1 }
 0x508   : > { %3329 = vpow2.f32 %v2988_v29 }
 0x50d   : > { %v2279_v32 = vpop.f32.mrf.mxu1 }
 0x50e   : > { %v2280_v44 = vadd.f32 %v3891_v27, %v2279_v32  ;;  %v2113_v27 = vadd.f32 %v2104_v17, %v2024_v0 }
 0x50f   : > { %v3221_v34 = vpop.f32.mrf.mxu1 }
 0x510   : > { %v2114_v41 = vadd.f32 %v2113_v27, %v3969_v52 }
 0x515   : > { %v3330_v46 = vpop.eup %3329 }
 0x516   : > { %v2126_v35 = vadd.f32 1.0, %v3330_v46 }
 0x518   : > { %3331 = vrcp.f32 %v2126_v35 }
 0x525   : > { %v3332_v37 = vpop.eup %3331 }
 0x526   : > { %v2129_v40 = vmul.f32 %v3332_v37, %v4034_v43 }
 0x528   : > { %3207 = vmatpush3.msra.mxu0 %v2129_v40 }
 0x529   : > { %3209 = vmatmul.mubr.msk.f32.vlgmr.msra.gmra.mxu0 %vm1011_vm2, %v3948_v45  ;;  %3222 = vmatprep.subr.mxu0 %v3448_v1  ;;  %v2987_v45 = vmul.f32 -1.442695, %v2114_v41 }
 0x52a   : > { %3223 = vmatpush3.xpose.msk.msra.mxu0 %vm918_vm14, %v2280_v44  ;;  %3224 = vmatprep.mubr.msk.f32.mxu0 %vm3449_vm0, %v3448_v1 }
 0x52b   : > { %3227 = vmatprep.subr.mxu0 %v3448_v1  ;;  %3333 = vpow2.f32 %v2987_v45 }
 0x52d   : > { %3225 = vmatmul.mubr.msk.f32.vlgmr.msra.gmra.mxu0 %vm918_vm14, %v4045_v5 }
 0x52e   : > { %3229 = vmatprep.mubr.msk.f32.mxu0 %vm3449_vm0, %v3448_v1 }
 0x538   : > { %v3334_v42 = vpop.eup %3333 }
 0x539   : > { %v2118_v47 = vadd.f32 1.0, %v3334_v42 }
 0x53b   : > { %3335 = vrcp.f32 %v2118_v47 }
 0x548   : > { %v3336_v52 = vpop.eup %3335 }
 0x554   : > { %v2478_v6 = vpop.permute.xlu1 %2477 }
 0x555   : > { %v2480_v8 = vmul.f32 %v2478_v6, %v4079_v20 }
 0x5e9   : > { %v2196_v49 = vpop.f32.mrf.mxu0 }
 0x5ea   : > { %v2200_v50 = vadd.f32 %v2196_v49, %v2034_v28 }
 0x5eb   : > { %v3210_v54 = vpop.f32.mrf.mxu0 }
 0x5ec   : > { %v2201_v56 = vadd.f32 %v2200_v50, %v3986_v9  ;;  %v2203_v9 = vsub.f32 1.0, %v3336_v52 }
 0x5ed   : > { %v2355_v57 = vpop.f32.mrf.mxu0 }
 0x5ee   : > { %3337 = vtanh.f32 %v2201_v56  ;;  %3228 = vmatpush3.xpose.msk.msra.mxu0 %vm1011_vm2, %v2355_v57 }
 0x5ef   : > { %v3226_v4 = vpop.f32.mrf.mxu0  ;;  %3232 = vmatprep.subr.mxu0 %v3448_v1 }
 0x5f1   : > { %3230 = vmatmul.mubr.msk.f32.vlgmr.msra.gmra.mxu0 %vm1011_vm2, %v2355_v57 }
 0x5f2   : > { %3233 = vmatpush3.xpose.msk.msra.mxu0 %vm918_vm14, %v3899_v31  ;;  %3240 = vmatprep.mubr.msk.f32.mxu0 %vm3449_vm0, %v3448_v1  ;;  %v2204_v31 = vmul.f32 %v4034_v43, %v2203_v9 }
 0x5f3   : > { %3234 = vmatprep.subr.mxu0 %v3448_v1 }
 0x5f6   : > { %3235 = vmatpush3.xpose.msk.msra.mxu0 %vm918_vm14, %v3911_v33  ;;  %v3000_v33 = vld [vmem:[%s3935_s24 + $0x1] sm:$0x1]  ;;  %s4287_s24 = sld [smem:[#allocation14_spill]] }
 0x5f7   : > { %3236 = vmatprep.subr.mxu0 %v3448_v1 }
 0x5fa   : > { %3237 = vmatpush3.xpose.msk.msra.mxu0 %vm918_vm14, %v3921_v38 }
 0x5fb   : > { %v3338_v51 = vpop.eup %3337  ;;  %3238 = vmatprep.subr.mxu0 %v3448_v1 }
 0x5fc   : > { %v2205_v7 = vmul.f32 %v3338_v51, %v3336_v52  ;;  %s3022_s28 = sshll.u32 %s4287_s24, 8 }
 0x5fd   : > { %s4149_s19 = scalar_lea.hbm %s4289_s20, %s3022_s28 }
 0x5fe   : > { %3239 = vmatpush3.xpose.msk.msra.mxu0 %vm918_vm14, %v3929_v39  ;;  %v2206_v60 = vadd.f32 %v2205_v7, %v2204_v31 }
 0x600   : > { %v2481_v10 = vadd.f32 %v2480_v8, %v2206_v60 }
 0x601   : > { %3241 = vmatmul.mubr.msk.f32.vlgmr.msra.gmra.mxu0 %vm918_vm14, %v3000_v33 }
 0x6b1   : > { %v2428_v11 = vpop.f32.mrf.mxu0 }
 0x6b2   : > { %v2482_v12 = vadd.f32 %v2481_v10, %v2428_v11 }
 0x6b3   : > { %v3231_v38 = vpop.f32.mrf.mxu0 }
 0x6b4   : > { %3009 = vst.msk [vmem:[%s4005_s15 + $0x8] sm:$0xff] %vm1011_vm2, %v2482_v12  ;;  %s3357_s15 = sshll.u32 %s3451_s18, 4  ;;  %s3358_s15 = int_to_ptr.vmem [resolvable:$false] %s3357_s15 }
 0x6b5   : > { %s3359_s30 = scalar_lea.vmem %s3358_s15, 512  ;;  %p3360_p5 = scmp.lt.s32.totalorder %s4142_s22, %s3358_s15 }
 0x6b6   : > { %p3361_p6 = scmp.lt.s32.totalorder %s3359_s30, %s3353_s26 }
 0x6b8   : > { %p3362_p7 = por %p3361_p6, %p3360_p5 }
 0x6ba   : > { %p3363_p8 = pnand %p3362_p7, %p3356_p4 }
 0x6c1   : > { %v2554_v13 = vpop.f32.mrf.mxu0 }
 0x6c2   : > { %v2555_v53 = vadd.f32 %v2554_v13, %v3980_v58  ;;  %v1740_v58 = vpop.permute.xlu1 %1739 }
 0x6c3   : > { %v3242_v43 = vpop.f32.mrf.mxu0 }
 0x6c4   : > { %3339 = vtanh.f32 %v2555_v53 }
 0x6d1   : > { %v3340_v55 = vpop.eup %3339 }
 0x6d2   : > { %v2562_v15 = vrot.slane %v3340_v55, %v1572_v14  ;;  %v1742_v14 = vmul.f32 %v2966_v2, %v1740_v58 }
 0x6d4   : > { %v2563_v39 = vmul.f32 %v2562_v15, %v4045_v5  ;;  %v1743_v61 = vmax.f32 %v1742_v14, 0.0 }
 0x6d6   : > { %v2564_v16 = vsel %vm918_vm14, %v2563_v39, 0.0 }
 0x6d7   : > { %2565 = vadd.xlane.f32.xlu0 %v2564_v16 }
 0x6ed   : > { %1653 = vperm.xlu0 %3303, %v4043_v48  }
 0x760   : > { %v2566_v59 = vpop.xlane.xlu0 %2565 }
 0x761   : > { %3244 = vmatpush3.msra.mxu1 %v2566_v59 }
 0x762   : > { %3246 = vmatmul.mubr.msk.f32.vlgmr.msra.gmra.mxu1 %vm1011_vm2, %v2482_v12  ;;  %3248 = vmatprep.subr.mxu1 %v3448_v1 }
 0x763   : > { %3249 = vmatpush3.msra.mxu1 %v2566_v59  ;;  %3250 = vmatprep.mubr.msk.f32.mxu1 %vm3449_vm0, %v3448_v1 }
 0x766   : > { %3251 = vmatmul.mubr.msk.f32.vlgmr.msra.gmra.mxu1 %vm1011_vm2, %v4015_v36 }
 0x768   : > { %v1654_v48 = vpop.permute.xlu0 %1653 }
 0x769   : > { %v1662_v5 = vmul.f32 %v2966_v2, %v1654_v48 }
 0x76b   : > { %v1663_v18 = vmax.f32 %v1662_v5, 0.0 }
 0x76d   : > { %v1744_v19 = vadd.f32 %v1743_v61, %v1663_v18 }
 0x76f   : > { %v1745_v62 = vmul.f32 0.5, %v1744_v19 }
 0x771   : > { %1746 = vst.msk [vmem:[%s4136_s0] sm:$0xff] %vm918_vm14, %v1745_v62 }
 0x822   : > { %v2636_v1 = vpop.f32.mrf.mxu1 }
 0x823   : > { %2642 = vperm.xlu1 %3304, %v2636_v1  }
 0x824   : > { %v3247_v36 = vpop.f32.mrf.mxu1 }
 0x826   : > { %v2713_v63 = vpop.f32.mrf.mxu1 }
 0x827   : > { %2719 = vperm.xlu0 %3303, %v2713_v63  }
 0x828   : > { %v3252_v20 = vpop.f32.mrf.mxu1 }
 0x829   : > { %3366 = shalt.err (!%p3363_p8)
}
 0x82a   : > { %s3367_s9 = scalar_lea.hbm %s4149_s19, 256  ;;  %s3371_s23 = scalar_lea.hbm %s4290_s17, 512 }
 0x82b   : > { %p3368_p9 = scmp.ne.s32.totalorder %s4149_s19, %s3367_s9  ;;  %p3372_p0 = scmp.lt.s32.totalorder %s4149_s19, %s4290_s17 }
 0x82c   : > { %p3373_p1 = scmp.lt.s32.totalorder %s3371_s23, %s3367_s9 }
 0x82d   : > { %p3369_p12 = pnand %p3368_p9, %p3591_p10 }
 0x82e   : > { %p3374_p2 = por %p3373_p1, %p3372_p0 }
 0x82f   : > { %p3370_p13 = pneg %p3369_p12 }
 0x831   : > { %p3375_p3 = pnand %p3374_p2, %p3370_p13 }
 0x833   : > { %3378 = shalt.err (!%p3375_p3)
}
 0x834   : > { %s3452_s26 = smov 128   ;;  %s3453_s18 = smov 8  }
 0x835   : > { %3254 = dma.vmem_to_hbm [thread:$0]  (%p3591_p10), %s4142_s22, 256, %s4149_s19, %s2736_s25, %s3452_s26, %s3452_s26, %s3453_s18  }
 0x836   : > { %s2749_s15 = sshll.u32 %s4136_s0, 4  ;;  %s4291_s29 = sld [smem:[#allocation25_spill]]  ;;  %s4185_s15 = int_to_ptr.vmem [resolvable:$true] %s2749_s15 }
 0x837   : > { %s2731_s22 = scalar_lea.sflag [#allocation5], %s4000_s21  ;;  %s3379_s19 = scalar_lea.vmem %s4185_s15, 256 }
 0x838   : > { %p3380_p4 = scmp.ne.s32.totalorder %s4185_s15, %s3379_s19  ;;  %s3454_s25 = smov [#allocation4]  }
 0x839   : > { %s3383_s24 = sshll.u32 %s3454_s25, 4  ;;  %s3384_s24 = int_to_ptr.vmem [resolvable:$false] %s3383_s24 }
 0x83a   : > { %p3381_p5 = pnand %p3380_p4, %p3591_p10  ;;  %s3385_s23 = scalar_lea.vmem %s3384_s24, 512 }
 0x83b   : > { %p3386_p7 = scmp.lt.s32.totalorder %s4185_s15, %s3384_s24  ;;  %p3387_p8 = scmp.lt.s32.totalorder %s3385_s23, %s3379_s19 }
 0x83c   : > { %s4183_s2 = scalar_lea.hbm %s4291_s29, %s3022_s28  ;;  %p3382_p6 = pneg %p3381_p5 }
 0x83d   : > { %p3388_p9 = por %p3387_p8, %p3386_p7 }
 0x83f   : > { %p3389_p12 = pnand %p3388_p9, %p3382_p6 }
 0x89e   : > { %v2643_v21 = vpop.permute.xlu1 %2642 }
 0x89f   : > { %v2645_v0 = vmul.f32 %v2966_v2, %v2643_v21 }
 0x8a1   : > { %v2646_v24 = vmax.f32 %v2645_v0, 0.0 }
 0x8a2   : > { %v2720_v3 = vpop.permute.xlu0 %2719 }
 0x8a3   : > { %v2722_v22 = vmul.f32 %v2966_v2, %v2720_v3 }
 0x8a5   : > { %v2723_v23 = vmax.f32 %v2722_v22, 0.0 }
 0x8a7   : > { %v2724_v25 = vadd.f32 %v2723_v23, %v2646_v24 }
 0x8a9   : > { %v2725_v26 = vmul.f32 0.5, %v2724_v25 }
 0x8ab   : > { %3008 = vst.msk [vmem:[%s4136_s0 + $0x8] sm:$0xff] %vm918_vm14, %v2725_v26 }
 0x8ac   : > { %3392 = shalt.err (!%p3389_p12)
}
 0x8ad   : > { %s3393_s0 = scalar_lea.hbm %s4183_s2, 256  ;;  %s3397_s16 = scalar_lea.hbm %s4291_s29, 512 }
 0x8ae   : > { %p3394_p13 = scmp.ne.s32.totalorder %s4183_s2, %s3393_s0  ;;  %p3398_p2 = scmp.lt.s32.totalorder %s4183_s2, %s4291_s29 }
 0x8af   : > { %p3399_p3 = scmp.lt.s32.totalorder %s3397_s16, %s3393_s0 }
 0x8b0   : > { %p3395_p0 = pnand %p3394_p13, %p3591_p10 }
 0x8b1   : > { %p3400_p4 = por %p3399_p3, %p3398_p2 }
 0x8b2   : > { %p3396_p1 = pneg %p3395_p0 }
 0x8b4   : > { %p3401_p5 = pnand %p3400_p4, %p3396_p1 }
 0x8b6   : > { %3404 = shalt.err (!%p3401_p5)
}
 0x8b7   : > { %3253 = dma.vmem_to_hbm [thread:$0]  (%p3591_p10), %s4185_s15, 256, %s4183_s2, %s2731_s22, %s3452_s26, %s3452_s26, %s3453_s18  }
 0x8b8 PF: > { %s4292_s9 = sld [smem:[#allocation13_spill]] }
 0x8b9   : > { %s4293_s19 = sld [smem:[#allocation11_spill]] }
 0x8be   : > { %p3264_p6 = scmp.ge.s32.totalorder %s4292_s9, 2 }
 0x8bf   : > { %s2780_s24 = sand.u32 1, %s4293_s19  }
 0x8c0   : > { %p3258_p7 = pnand %p3264_p6, %p3595_p11  ;;  %s2781_s23 = scalar_lea.sflag [#allocation5], %s2780_s24 }
 0x8c2   : > { %p3259_p8 = pneg %p3258_p7 }
 0x8c4   : > { %3424 = dma.done.wait (%p3259_p8), %s2781_s23, 256  }
 0x8c5   : > { %3426 = vsyncadd (%p3259_p8), %s2781_s23, 4294967040  ;;  %s2790_s0 = scalar_lea.sflag [#allocation7], %s2780_s24 }
 0x8c6   : > { %3428 = dma.done.wait (%p3259_p8), %s2790_s0, 256  }
 0x8c7   : > { %3430 = vsyncadd (%p3259_p8), %s2790_s0, 4294967040  ;;  %s4295_s21 = sld [smem:[#allocation15_spill]]  ;;  %s4298_s19 = smov %s3437_s1 }
 0x8c8   : > { %s4296_s27 = sld [smem:[#allocation12_spill]] }
 0x8c9   : > { %s4297_s20 = sld [smem:[#allocation16_spill]] }
 0x8cd   : > { %p38_p10 = scmp.ge.s32.totalorder %s4295_s21, 4  }
 0x8ce   : > { %s4299_s1 = smov %s4296_s27 }
 0x8cf   :  { %40 = sbr.rel (!%p38_p10) target bundleno = 34 (0x22), region = 159 }
 0x8d4   :  { %2795 = vsyncpa [#allocation5], 1 }
 0x8d5   :  { %2797 = vsyncpa [#allocation5 + $0x1], 1 }
 0x8d6   :  { %2798 = vsyncpa [#allocation7], 1 }
 0x8d7   :  { %2800 = vsyncpa [#allocation7 + $0x1], 1 }

</bundles_post_ra>
